<compile_context>
chip_gen: v6e
topology: v6e:2x2x1
jax: 0.10.0
libtpu: 0.0.40
codegen_flags: <defaults>
</compile_context>

<pallas_src>
import math

import jax
import jax.numpy as jnp
from jax.experimental import pallas as pl
from jax.experimental.pallas import tpu as pltpu


# ===================================================================== kernel
def _shift_circ(x, shift, axis):
    """Circular shift (jnp.roll semantics) along one of the last two axes."""
    axis = axis % x.ndim
    size = x.shape[axis]
    s = shift % size
    if s == 0:
        return x
    # pltpu.roll goes to the XLU (free slot) when the trailing dims are
    # (8, 128)-tile aligned (production d_model >= 128).  Small unaligned demo
    # shapes take the slice+concat fallback, which Mosaic lowers for any shape.
    if x.shape[-1] % 128 == 0 and x.shape[-2] % 8 == 0:
        return pltpu.roll(x, s, axis=axis)
    lo = [slice(None)] * x.ndim
    hi = [slice(None)] * x.ndim
    lo[axis] = slice(size - s, None)
    hi[axis] = slice(None, size - s)
    return jnp.concatenate([x[tuple(lo)], x[tuple(hi)]], axis=axis)


def _layernorm(x, g, b, eps=1e-5):
    mu = jnp.mean(x, axis=-1, keepdims=True)
    var = jnp.mean((x - mu) ** 2, axis=-1, keepdims=True)
    return (x - mu) * jax.lax.rsqrt(var + eps) * g + b


def _softmax_k(s, approx):
    """In-kernel softmax; reciprocal goes to the EUP slot."""
    m = jnp.max(s, axis=-1, keepdims=True)
    e = jnp.exp(s - m)
    return e * pl.reciprocal(jnp.sum(e, axis=-1, keepdims=True), approx=approx)


def _cconv_rows(z, w, b, mxu_dtype):
    """Tap-fused circular Conv1d along the fea axis (axis 1), channel-last.

    z: (bt, F, Cin) f32; w: (3*Cin, Cout); b: (1, Cout) f32 -> (bt, F, Cout) f32.
    One MXU matmul with M = bt*F, K = 3*Cin instead of 3 small matmuls.
    """
    bt, F_, cin = z.shape
    z3 = jnp.concatenate(
        [_shift_circ(z, 1, 1), z, _shift_circ(z, -1, 1)], axis=-1)   # (bt,F,3Cin)
    z2 = z3.reshape(bt * F_, 3 * cin).astype(mxu_dtype)               # layout-free
    y = jnp.dot(z2, w, preferred_element_type=jnp.float32) + b
    return y.reshape(bt, F_, w.shape[-1])


def make_kernel(*, n_heads, mxu_dtype, approx_recip):
    def kernel(x_ref, w_qkv, b_qkv, w_us, b_us, w_c1, b_c1, w_c2, b_c2,
               g1, be1, w_u1, b_u1, w_u2, b_u2, g2, be2, out_ref):
        x = x_ref[...]                              # (bt, F, D)  float32
        bt, F_, D = x.shape
        hd = D // n_heads
        scale = 1.0 / math.sqrt(n_heads)            # matches the torch module

        # ---- Q/K/V for both DWT bands: ONE tap-fused matmul ---------------
        qkv = _cconv_rows(x, w_qkv[...], b_qkv[...], mxu_dtype)  # (bt, F, 6D)
        qh, kh, vh = qkv[..., 0:D], qkv[..., D:2 * D], qkv[..., 2 * D:3 * D]
        ql, kl, vl = (qkv[..., 3 * D:4 * D], qkv[..., 4 * D:5 * D],
                      qkv[..., 5 * D:6 * D])

        # ---- cross-band attention, batched over the batch tile ------------
        # heads stay a short static loop (hd is tiny); each einsum is the
        # doc-endorsed single-batch-dim pattern that lowers on TPU.
        h_parts, l_parts = [], []
        for h in range(n_heads):
            sl = slice(h * hd, (h + 1) * hd)
            qh_h = qh[..., sl].astype(mxu_dtype)
            kh_h = kh[..., sl].astype(mxu_dtype)
            vh_h = vh[..., sl].astype(mxu_dtype)
            ql_h = ql[..., sl].astype(mxu_dtype)
            kl_h = kl[..., sl].astype(mxu_dtype)
            vl_h = vl[..., sl].astype(mxu_dtype)

            s_h = jnp.einsum('bqd,bkd->bqk', qh_h, kl_h,
                             preferred_element_type=jnp.float32) * scale
            p_h = _softmax_k(s_h, approx_recip)
            h_parts.append(jnp.einsum('bqk,bkd->bqd',
                                      p_h.astype(mxu_dtype), vh_h,
                                      preferred_element_type=jnp.float32))

            s_l = jnp.einsum('bqd,bkd->bqk', ql_h, kh_h,
                             preferred_element_type=jnp.float32) * scale
            p_l = _softmax_k(s_l, approx_recip)
            l_parts.append(jnp.einsum('bqk,bkd->bqd',
                                      p_l.astype(mxu_dtype), vl_h,
                                      preferred_element_type=jnp.float32))
        h_ctx = jnp.concatenate(h_parts, axis=-1)                 # (bt, F, D)
        l_ctx = jnp.concatenate(l_parts, axis=-1)                 # (bt, F, D)
        ctx = jnp.concatenate([h_ctx, l_ctx], axis=1)             # (bt, 2F, D)

        # ---- unsampleconv: circular conv over length d_model, tap-fused ---
        ctx_stack = jnp.concatenate(
            [_shift_circ(ctx, 1, 2), ctx, _shift_circ(ctx, -1, 2)],
            axis=1)                                               # (bt, 6F, D)
        w_us_v = w_us[...]                                        # (F, 6F)
        w_us_b = jnp.broadcast_to(w_us_v, (bt,) + w_us_v.shape)
        y = jnp.einsum('bok,bkd->bod', w_us_b,
                       ctx_stack.astype(mxu_dtype),
                       preferred_element_type=jnp.float32) + b_us[...]

        # ---- Convlayer: D -> d_ff -> D/2 + LayerNorm -----------------------
        c = jnp.maximum(_cconv_rows(y, w_c1[...], b_c1[...], mxu_dtype), 0.0)
        c = _layernorm(_cconv_rows(c, w_c2[...], b_c2[...], mxu_dtype),
                       g1[...], be1[...])

        # ---- upsizeConvlayer: D/2 -> d_ff -> D + LayerNorm -----------------
        u = jnp.maximum(_cconv_rows(c, w_u1[...], b_u1[...], mxu_dtype), 0.0)
        u = _layernorm(_cconv_rows(u, w_u2[...], b_u2[...], mxu_dtype),
                       g2[...], be2[...])

        # residual (f32) — x was read before this single final write, so the
        # output block can safely alias the input block in HBM.
        out_ref[...] = (u + x).astype(out_ref.dtype)

    return kernel


# ==================================================================== wrapper
def fre_encoder_layer(x, params, *, n_heads, fd_num=1, batch_tile=None,
                      mxu_dtype=jnp.float32):
    """Fre_EncoderLayer forward.  params are in the original (unfused) layout;
    DWT folding / tap fusion / QKV fusion happen here at trace time."""
    assert fd_num == 1, "kernel instantiated for fd_num == 1"
    (wq, bq, wk, bk, wv, bv, wus, bus,
     wc1, bc1, wc2, bc2, g1, be1,
     wu1, bu1, wu2, bu2, g2, be2) = params
    B, F_, D = x.shape
    D2 = D // 2
    dff = wc1.shape[-1]

    bt = B if batch_tile is None else batch_tile
    assert B % bt == 0, "batch_tile must divide the batch"

    f32 = jnp.float32
    inv_s = 1.0 / math.sqrt(2.0)
    eye = jnp.eye(D2, dtype=f32)
    # Haar ('db1', even length) analysis matrices:  cA = x @ Ha,  cD = x @ Hd.
    ha = jnp.zeros((D, D2), f32).at[0::2].set(inv_s * eye).at[1::2].add(inv_s * eye)
    hd_m = jnp.zeros((D, D2), f32).at[0::2].set(inv_s * eye).at[1::2].add(-inv_s * eye)

    # Fuse (DWT fold) x (3 conv taps) x (Q,K,V) x (2 bands) -> (3*D, 6*D).
    def fold(hmat, w):                      # w: (3, D2, D) -> (3, D, D)
        return jnp.einsum('dc,tcm->tdm', hmat, w)
    per_tap = jnp.concatenate(
        [fold(ha, wq), fold(ha, wk), fold(ha, wv),
         fold(hd_m, wq), fold(hd_m, wk), fold(hd_m, wv)], axis=-1)  # (3, D, 6D)
    w_qkv = per_tap.reshape(3 * D, 6 * D)
    b_qkv = jnp.concatenate([bq, bk, bv, bq, bk, bv], axis=-1)      # (1, 6D)

    # Tap-fused channel-last conv weights (contract over 3*Cin).
    w_c1 = wc1.reshape(3 * D, dff)
    w_c2 = wc2.reshape(3 * dff, D2)
    w_u1 = wu1.reshape(3 * D2, dff)
    w_u2 = wu2.reshape(3 * dff, D)
    # unsampleconv (channel-first over length d_model): (3, F, 2F) -> (F, 6F).
    w_us = jnp.transpose(wus, (1, 0, 2)).reshape(F_, 3 * 2 * F_)

    mm = lambda w: w.astype(mxu_dtype)      # MXU operands (bf16 on v6e/v7x)
    kparams = (mm(w_qkv), b_qkv, mm(w_us), bus,
               mm(w_c1), bc1, mm(w_c2), bc2, g1, be1,
               mm(w_u1), bu1, mm(w_u2), bu2, g2, be2)

    def full(p):
        nd = p.ndim
        return pl.BlockSpec(p.shape, lambda b, _n=nd: (0,) * _n)

    in_specs = ([pl.BlockSpec((bt, F_, D), lambda b: (b, 0, 0))]
                + [full(p) for p in kparams])
    # NOTE: with the tiny demo d_model (32 < 128) the output store is masked;
    # production d_model >= 128 makes it lane-dense.  We keep the natural
    # (bt, F, D) block so the residual input can alias the output buffer.
    out_spec = pl.BlockSpec((bt, F_, D), lambda b: (b, 0, 0))

    kernel = make_kernel(n_heads=n_heads, mxu_dtype=mxu_dtype,
                         approx_recip=(mxu_dtype != jnp.float32))
    out = pl.pallas_call(
        kernel,
        out_shape=jax.ShapeDtypeStruct((B, F_, D), x.dtype),
        grid=(B // bt,),
        in_specs=in_specs,
        out_specs=out_spec,
        # x is only read before the single final write of its block, so alias
        # it with the output (saves one output HBM buffer + its writes).
        input_output_aliases={0: 0},
        compiler_params=pltpu.CompilerParams(
            # Independent batch tiles -> shard across TensorCores on v7x.
            dimension_semantics=("parallel",)),
    )(x, *kparams)
    return out


# ============================================================ plain-JAX reference
def _ref_circ_conv_cl(x, w, b):
    L = x.shape[0]
    hp = jax.lax.Precision.HIGHEST
    xm = jnp.concatenate([x[L - 1:], x[:L - 1]], axis=0)
    xp = jnp.concatenate([x[1:], x[:1]], axis=0)
    return (jnp.dot(xm, w[0], precision=hp) + jnp.dot(x, w[1], precision=hp)
            + jnp.dot(xp, w[2], precision=hp) + b)


def _ref_circ_conv_cf(x, w, b):
    L = x.shape[1]
    hp = jax.lax.Precision.HIGHEST
    xm = jnp.concatenate([x[:, L - 1:], x[:, :L - 1]], axis=1)
    xp = jnp.concatenate([x[:, 1:], x[:, :1]], axis=1)
    return (jnp.dot(w[0], xm, precision=hp) + jnp.dot(w[1], x, precision=hp)
            + jnp.dot(w[2], xp, precision=hp) + b)


def _ref_softmax(x):
    m = jnp.max(x, axis=-1, keepdims=True)
    e = jnp.exp(x - m)
    return e / jnp.sum(e, axis=-1, keepdims=True)


def _ref_forward_single(x1, x2, xin, params, n_heads):
    (wq, bq, wk, bk, wv, bv, wus, bus,
     wc1, bc1, wc2, bc2, g1, be1,
     wu1, bu1, wu2, bu2, g2, be2) = params
    D = xin.shape[-1]
    hd = D // n_heads
    scale = 1.0 / math.sqrt(n_heads)
    hp = jax.lax.Precision.HIGHEST

    qh = _ref_circ_conv_cl(x1, wq, bq); kh = _ref_circ_conv_cl(x1, wk, bk)
    vh = _ref_circ_conv_cl(x1, wv, bv)
    ql = _ref_circ_conv_cl(x2, wq, bq); kl = _ref_circ_conv_cl(x2, wk, bk)
    vl = _ref_circ_conv_cl(x2, wv, bv)

    dn = (((1,), (1,)), ((), ()))
    h_parts, l_parts = [], []
    for h in range(n_heads):
        sl = slice(h * hd, (h + 1) * hd)
        sc_h = jax.lax.dot_general(qh[:, sl], kl[:, sl], dn, precision=hp) * scale
        h_parts.append(jnp.dot(_ref_softmax(sc_h), vh[:, sl], precision=hp))
        sc_l = jax.lax.dot_general(ql[:, sl], kh[:, sl], dn, precision=hp) * scale
        l_parts.append(jnp.dot(_ref_softmax(sc_l), vl[:, sl], precision=hp))
    ctx = jnp.concatenate([jnp.concatenate(h_parts, axis=-1),
                           jnp.concatenate(l_parts, axis=-1)], axis=0)

    y = _ref_circ_conv_cf(ctx, wus, bus)
    c = jnp.maximum(_ref_circ_conv_cl(y, wc1, bc1), 0.0)
    c = _layernorm(_ref_circ_conv_cl(c, wc2, bc2), g1, be1)
    u = jnp.maximum(_ref_circ_conv_cl(c, wu1, bu1), 0.0)
    u = _layernorm(_ref_circ_conv_cl(u, wu2, bu2), g2, be2)
    return (u + xin).astype(xin.dtype)


def reference_forward(x, params, *, n_heads):
    s = jnp.sqrt(jnp.asarray(2.0, x.dtype))
    xa = (x[..., 0::2] + x[..., 1::2]) / s   # cA (Haar == pywt 'db1', even len)
    xd = (x[..., 0::2] - x[..., 1::2]) / s   # cD
    outs = [_ref_forward_single(xa[b], xd[b], x[b], params, n_heads)
            for b in range(x.shape[0])]
    return jnp.stack(outs, axis=0)


# ======================================================================= main
if __name__ == "__main__":
    B, FEA, D_MODEL, D_FF, N_HEADS, FD_NUM = 2, 8, 32, 32, 4, 1
    D2 = D_MODEL // (2 ** FD_NUM)

    key = jax.random.PRNGKey(0)
    ks = jax.random.split(key, 32)
    nrm = lambda k, shp, sc=0.1: sc * jax.random.normal(k, shp, jnp.float32)

    params = (
        # Query / Key / Value Conv1d(D2 -> D, k=3, circular): w (3, Cin, Cout)
        nrm(ks[0], (3, D2, D_MODEL)), nrm(ks[1], (1, D_MODEL)),
        nrm(ks[2], (3, D2, D_MODEL)), nrm(ks[3], (1, D_MODEL)),
        nrm(ks[4], (3, D2, D_MODEL)), nrm(ks[5], (1, D_MODEL)),
        # unsampleconv Conv1d(2*FEA -> FEA, k=3, circular): w (3, Cout, Cin)
        nrm(ks[6], (3, FEA, 2 * FEA)), nrm(ks[7], (FEA, 1)),
        # Convlayer: D -> d_ff -> D2, LayerNorm(D2)
        nrm(ks[8], (3, D_MODEL, D_FF)), nrm(ks[9], (1, D_FF)),
        nrm(ks[10], (3, D_FF, D2)), nrm(ks[11], (1, D2)),
        jnp.ones((1, D2), jnp.float32), jnp.zeros((1, D2), jnp.float32),
        # upsizeConvlayer: D2 -> d_ff -> D, LayerNorm(D)
        nrm(ks[12], (3, D2, D_FF)), nrm(ks[13], (1, D_FF)),
        nrm(ks[14], (3, D_FF, D_MODEL)), nrm(ks[15], (1, D_MODEL)),
        jnp.ones((1, D_MODEL), jnp.float32), jnp.zeros((1, D_MODEL), jnp.float32),
    )

    x = jax.random.normal(ks[16], (B, FEA, D_MODEL), jnp.float32)
    # Kernel aliases (donates) its input buffer -> use private copies per call
    # and compute the reference first.
    x_run_f32 = jnp.array(x, copy=True)
    x_run_bf16 = jnp.array(x, copy=True)

    ref = jax.block_until_ready(reference_forward(x, params, n_heads=N_HEADS))

    out = jax.block_until_ready(
        fre_encoder_layer(x_run_f32, params, n_heads=N_HEADS, fd_num=FD_NUM))
    assert out.shape == (B, FEA, D_MODEL)
    err = float(jnp.max(jnp.abs(out - ref)))
    # Expected ~1e-5; margin covers XLA(HIGHEST)-vs-MXU f32 matmul differences.
    # Real structural bugs produce errors >= 0.1 at these scales.
    assert err < 2e-2, f"f32 kernel mismatch vs reference: {err}"

    # bf16 MXU-operand mode (recommended for v6e/v7x): loose sanity check only.
    out_bf16 = jax.block_until_ready(
        fre_encoder_layer(x_run_bf16, params, n_heads=N_HEADS, fd_num=FD_NUM,
                          mxu_dtype=jnp.bfloat16))
    assert bool(jnp.all(jnp.isfinite(out_bf16)))
    err_bf16 = float(jnp.max(jnp.abs(out_bf16 - ref)))
    assert err_bf16 < 0.5, f"bf16 kernel sanity check failed: {err_bf16}"

    print("KERNEL_OK")
</pallas_src>

<mosaic_0001>
module attributes {stable_mosaic.version = 11 : i64} {
  func.func @kernel(%arg0: i32, %arg1: memref<2x8x32xf32, #tpu.memory_space<vmem>>, %arg2: memref<96x192xf32, #tpu.memory_space<vmem>>, %arg3: memref<1x192xf32, #tpu.memory_space<vmem>>, %arg4: memref<8x48xf32, #tpu.memory_space<vmem>>, %arg5: memref<8x1xf32, #tpu.memory_space<vmem>>, %arg6: memref<96x32xf32, #tpu.memory_space<vmem>>, %arg7: memref<1x32xf32, #tpu.memory_space<vmem>>, %arg8: memref<96x16xf32, #tpu.memory_space<vmem>>, %arg9: memref<1x16xf32, #tpu.memory_space<vmem>>, %arg10: memref<1x16xf32, #tpu.memory_space<vmem>>, %arg11: memref<1x16xf32, #tpu.memory_space<vmem>>, %arg12: memref<48x32xf32, #tpu.memory_space<vmem>>, %arg13: memref<1x32xf32, #tpu.memory_space<vmem>>, %arg14: memref<96x32xf32, #tpu.memory_space<vmem>>, %arg15: memref<1x32xf32, #tpu.memory_space<vmem>>, %arg16: memref<1x32xf32, #tpu.memory_space<vmem>>, %arg17: memref<1x32xf32, #tpu.memory_space<vmem>>, %arg18: memref<2x8x32xf32, #tpu.memory_space<vmem>>) attributes {dimension_semantics = [#tpu.dimension_semantics<parallel>], iteration_bounds = array<i64: 1>, scalar_prefetch = 0 : i64, scratch_operands = 0 : i64, tpu.core_type = #tpu.core_type<tc>, window_params = [{transform_indices = @transform_0, window_bounds = array<i64: 2, 8, 32>}, {pipeline_mode = #tpu.pipeline_mode<synchronous>, transform_indices = @transform_1, window_bounds = array<i64: 96, 192>}, {pipeline_mode = #tpu.pipeline_mode<synchronous>, transform_indices = @transform_2, window_bounds = array<i64: 1, 192>}, {pipeline_mode = #tpu.pipeline_mode<synchronous>, transform_indices = @transform_3, window_bounds = array<i64: 8, 48>}, {pipeline_mode = #tpu.pipeline_mode<synchronous>, transform_indices = @transform_4, window_bounds = array<i64: 8, 1>}, {pipeline_mode = #tpu.pipeline_mode<synchronous>, transform_indices = @transform_5, window_bounds = array<i64: 96, 32>}, {pipeline_mode = #tpu.pipeline_mode<synchronous>, transform_indices = @transform_6, window_bounds = array<i64: 1, 32>}, {pipeline_mode = #tpu.pipeline_mode<synchronous>, transform_indices = @transform_7, window_bounds = array<i64: 96, 16>}, {pipeline_mode = #tpu.pipeline_mode<synchronous>, transform_indices = @transform_8, window_bounds = array<i64: 1, 16>}, {pipeline_mode = #tpu.pipeline_mode<synchronous>, transform_indices = @transform_9, window_bounds = array<i64: 1, 16>}, {pipeline_mode = #tpu.pipeline_mode<synchronous>, transform_indices = @transform_10, window_bounds = array<i64: 1, 16>}, {pipeline_mode = #tpu.pipeline_mode<synchronous>, transform_indices = @transform_11, window_bounds = array<i64: 48, 32>}, {pipeline_mode = #tpu.pipeline_mode<synchronous>, transform_indices = @transform_12, window_bounds = array<i64: 1, 32>}, {pipeline_mode = #tpu.pipeline_mode<synchronous>, transform_indices = @transform_13, window_bounds = array<i64: 96, 32>}, {pipeline_mode = #tpu.pipeline_mode<synchronous>, transform_indices = @transform_14, window_bounds = array<i64: 1, 32>}, {pipeline_mode = #tpu.pipeline_mode<synchronous>, transform_indices = @transform_15, window_bounds = array<i64: 1, 32>}, {pipeline_mode = #tpu.pipeline_mode<synchronous>, transform_indices = @transform_16, window_bounds = array<i64: 1, 32>}, {transform_indices = @transform_17, window_bounds = array<i64: 2, 8, 32>}]} {
    %c0 = arith.constant 0 : index
    %c0_0 = arith.constant 0 : index
    %c0_1 = arith.constant 0 : index
    %0 = vector.load %arg1[%c0, %c0_0, %c0_1] : memref<2x8x32xf32, #tpu.memory_space<vmem>>, vector<2x8x32xf32>
    %c0_2 = arith.constant 0 : index
    %c0_3 = arith.constant 0 : index
    %1 = vector.load %arg2[%c0_2, %c0_3] : memref<96x192xf32, #tpu.memory_space<vmem>>, vector<96x192xf32>
    %c0_4 = arith.constant 0 : index
    %c0_5 = arith.constant 0 : index
    %2 = vector.load %arg3[%c0_4, %c0_5] : memref<1x192xf32, #tpu.memory_space<vmem>>, vector<1x192xf32>
    %3 = vector.extract_strided_slice %0 {offsets = [0, 7, 0], sizes = [2, 1, 32], strides = [1, 1, 1]} : vector<2x8x32xf32> to vector<2x1x32xf32>
    %4 = vector.extract_strided_slice %0 {offsets = [0, 0, 0], sizes = [2, 7, 32], strides = [1, 1, 1]} : vector<2x8x32xf32> to vector<2x7x32xf32>
    %5 = tpu.concatenate %3, %4 in 1 : vector<2x1x32xf32>, vector<2x7x32xf32> -> vector<2x8x32xf32>
    %6 = vector.extract_strided_slice %0 {offsets = [0, 1, 0], sizes = [2, 7, 32], strides = [1, 1, 1]} : vector<2x8x32xf32> to vector<2x7x32xf32>
    %7 = vector.extract_strided_slice %0 {offsets = [0, 0, 0], sizes = [2, 1, 32], strides = [1, 1, 1]} : vector<2x8x32xf32> to vector<2x1x32xf32>
    %8 = tpu.concatenate %6, %7 in 1 : vector<2x7x32xf32>, vector<2x1x32xf32> -> vector<2x8x32xf32>
    %9 = tpu.concatenate %5, %0, %8 in 2 : vector<2x8x32xf32>, vector<2x8x32xf32>, vector<2x8x32xf32> -> vector<2x8x96xf32>
    %10 = vector.shape_cast %9 : vector<2x8x96xf32> to vector<16x96xf32>
    %cst = arith.constant dense<0.000000e+00> : vector<16x192xf32>
    %11 = tpu.matmul %10, %1, %cst {dimension_numbers = #tpu.dot_dimension_numbers<[1], [0], [0], [1], [0, 0, 1, 1], [], []>} : vector<16x96xf32>, vector<96x192xf32>, vector<16x192xf32> -> vector<16x192xf32>
    %12 = vector.broadcast %2 : vector<1x192xf32> to vector<16x192xf32>
    %13 = arith.addf %11, %12 : vector<16x192xf32>
    %14 = vector.shape_cast %13 : vector<16x192xf32> to vector<2x8x192xf32>
    %15 = vector.extract_strided_slice %14 {offsets = [0, 0, 0], sizes = [2, 8, 32], strides = [1, 1, 1]} : vector<2x8x192xf32> to vector<2x8x32xf32>
    %16 = vector.extract_strided_slice %14 {offsets = [0, 0, 32], sizes = [2, 8, 32], strides = [1, 1, 1]} : vector<2x8x192xf32> to vector<2x8x32xf32>
    %17 = vector.extract_strided_slice %14 {offsets = [0, 0, 64], sizes = [2, 8, 32], strides = [1, 1, 1]} : vector<2x8x192xf32> to vector<2x8x32xf32>
    %18 = vector.extract_strided_slice %14 {offsets = [0, 0, 96], sizes = [2, 8, 32], strides = [1, 1, 1]} : vector<2x8x192xf32> to vector<2x8x32xf32>
    %19 = vector.extract_strided_slice %14 {offsets = [0, 0, 128], sizes = [2, 8, 32], strides = [1, 1, 1]} : vector<2x8x192xf32> to vector<2x8x32xf32>
    %20 = vector.extract_strided_slice %14 {offsets = [0, 0, 160], sizes = [2, 8, 32], strides = [1, 1, 1]} : vector<2x8x192xf32> to vector<2x8x32xf32>
    %21 = vector.extract_strided_slice %15 {offsets = [0, 0, 0], sizes = [2, 8, 8], strides = [1, 1, 1]} : vector<2x8x32xf32> to vector<2x8x8xf32>
    %22 = vector.extract_strided_slice %16 {offsets = [0, 0, 0], sizes = [2, 8, 8], strides = [1, 1, 1]} : vector<2x8x32xf32> to vector<2x8x8xf32>
    %23 = vector.extract_strided_slice %17 {offsets = [0, 0, 0], sizes = [2, 8, 8], strides = [1, 1, 1]} : vector<2x8x32xf32> to vector<2x8x8xf32>
    %24 = vector.extract_strided_slice %18 {offsets = [0, 0, 0], sizes = [2, 8, 8], strides = [1, 1, 1]} : vector<2x8x32xf32> to vector<2x8x8xf32>
    %25 = vector.extract_strided_slice %19 {offsets = [0, 0, 0], sizes = [2, 8, 8], strides = [1, 1, 1]} : vector<2x8x32xf32> to vector<2x8x8xf32>
    %26 = vector.extract_strided_slice %20 {offsets = [0, 0, 0], sizes = [2, 8, 8], strides = [1, 1, 1]} : vector<2x8x32xf32> to vector<2x8x8xf32>
    "tpu.trace_start"() <{level = 10 : i32, message = "bqd,bkd->bqk"}> : () -> ()
    %cst_6 = arith.constant dense<0.000000e+00> : vector<2x8x8xf32>
    %27 = tpu.matmul %21, %25, %cst_6 {dimension_numbers = #tpu.dot_dimension_numbers<[2], [2], [1], [1], [0, 0, 0, 1, 1, 1], [0], [0]>} : vector<2x8x8xf32>, vector<2x8x8xf32>, vector<2x8x8xf32> -> vector<2x8x8xf32>
    "tpu.trace_stop"() : () -> ()
    %cst_7 = arith.constant 5.000000e-01 : f32
    %28 = vector.broadcast %cst_7 : f32 to vector<2x8x8xf32>
    %29 = arith.mulf %27, %28 : vector<2x8x8xf32>
    %cst_8 = arith.constant dense<0xFF800000> : vector<2x8xf32>
    %30 = vector.multi_reduction <maximumf>, %29, %cst_8 [2] : vector<2x8x8xf32> to vector<2x8xf32>
    %31 = vector.shape_cast %30 : vector<2x8xf32> to vector<2x8x1xf32>
    %32 = vector.broadcast %31 : vector<2x8x1xf32> to vector<2x8x8xf32>
    %33 = arith.subf %29, %32 : vector<2x8x8xf32>
    %34 = math.exp %33 : vector<2x8x8xf32>
    %cst_9 = arith.constant dense<0.000000e+00> : vector<2x8xf32>
    %35 = vector.multi_reduction <add>, %34, %cst_9 [2] : vector<2x8x8xf32> to vector<2x8xf32>
    %36 = vector.shape_cast %35 : vector<2x8xf32> to vector<2x8x1xf32>
    %37 = tpu.reciprocal %36 : vector<2x8x1xf32> -> vector<2x8x1xf32>
    %38 = vector.broadcast %37 : vector<2x8x1xf32> to vector<2x8x8xf32>
    %39 = arith.mulf %34, %38 : vector<2x8x8xf32>
    "tpu.trace_start"() <{level = 10 : i32, message = "bqk,bkd->bqd"}> : () -> ()
    %cst_10 = arith.constant dense<0.000000e+00> : vector<2x8x8xf32>
    %40 = tpu.matmul %39, %23, %cst_10 {dimension_numbers = #tpu.dot_dimension_numbers<[2], [1], [1], [2], [0, 0, 0, 1, 1, 2], [0], [0]>} : vector<2x8x8xf32>, vector<2x8x8xf32>, vector<2x8x8xf32> -> vector<2x8x8xf32>
    "tpu.trace_stop"() : () -> ()
    "tpu.trace_start"() <{level = 10 : i32, message = "bqd,bkd->bqk"}> : () -> ()
    %cst_11 = arith.constant dense<0.000000e+00> : vector<2x8x8xf32>
    %41 = tpu.matmul %24, %22, %cst_11 {dimension_numbers = #tpu.dot_dimension_numbers<[2], [2], [1], [1], [0, 0, 0, 1, 1, 1], [0], [0]>} : vector<2x8x8xf32>, vector<2x8x8xf32>, vector<2x8x8xf32> -> vector<2x8x8xf32>
    "tpu.trace_stop"() : () -> ()
    %cst_12 = arith.constant 5.000000e-01 : f32
    %42 = vector.broadcast %cst_12 : f32 to vector<2x8x8xf32>
    %43 = arith.mulf %41, %42 : vector<2x8x8xf32>
    %cst_13 = arith.constant dense<0xFF800000> : vector<2x8xf32>
    %44 = vector.multi_reduction <maximumf>, %43, %cst_13 [2] : vector<2x8x8xf32> to vector<2x8xf32>
    %45 = vector.shape_cast %44 : vector<2x8xf32> to vector<2x8x1xf32>
    %46 = vector.broadcast %45 : vector<2x8x1xf32> to vector<2x8x8xf32>
    %47 = arith.subf %43, %46 : vector<2x8x8xf32>
    %48 = math.exp %47 : vector<2x8x8xf32>
    %cst_14 = arith.constant dense<0.000000e+00> : vector<2x8xf32>
    %49 = vector.multi_reduction <add>, %48, %cst_14 [2] : vector<2x8x8xf32> to vector<2x8xf32>
    %50 = vector.shape_cast %49 : vector<2x8xf32> to vector<2x8x1xf32>
    %51 = tpu.reciprocal %50 : vector<2x8x1xf32> -> vector<2x8x1xf32>
    %52 = vector.broadcast %51 : vector<2x8x1xf32> to vector<2x8x8xf32>
    %53 = arith.mulf %48, %52 : vector<2x8x8xf32>
    "tpu.trace_start"() <{level = 10 : i32, message = "bqk,bkd->bqd"}> : () -> ()
    %cst_15 = arith.constant dense<0.000000e+00> : vector<2x8x8xf32>
    %54 = tpu.matmul %53, %26, %cst_15 {dimension_numbers = #tpu.dot_dimension_numbers<[2], [1], [1], [2], [0, 0, 0, 1, 1, 2], [0], [0]>} : vector<2x8x8xf32>, vector<2x8x8xf32>, vector<2x8x8xf32> -> vector<2x8x8xf32>
    "tpu.trace_stop"() : () -> ()
    %55 = vector.extract_strided_slice %15 {offsets = [0, 0, 8], sizes = [2, 8, 8], strides = [1, 1, 1]} : vector<2x8x32xf32> to vector<2x8x8xf32>
    %56 = vector.extract_strided_slice %16 {offsets = [0, 0, 8], sizes = [2, 8, 8], strides = [1, 1, 1]} : vector<2x8x32xf32> to vector<2x8x8xf32>
    %57 = vector.extract_strided_slice %17 {offsets = [0, 0, 8], sizes = [2, 8, 8], strides = [1, 1, 1]} : vector<2x8x32xf32> to vector<2x8x8xf32>
    %58 = vector.extract_strided_slice %18 {offsets = [0, 0, 8], sizes = [2, 8, 8], strides = [1, 1, 1]} : vector<2x8x32xf32> to vector<2x8x8xf32>
    %59 = vector.extract_strided_slice %19 {offsets = [0, 0, 8], sizes = [2, 8, 8], strides = [1, 1, 1]} : vector<2x8x32xf32> to vector<2x8x8xf32>
    %60 = vector.extract_strided_slice %20 {offsets = [0, 0, 8], sizes = [2, 8, 8], strides = [1, 1, 1]} : vector<2x8x32xf32> to vector<2x8x8xf32>
    "tpu.trace_start"() <{level = 10 : i32, message = "bqd,bkd->bqk"}> : () -> ()
    %cst_16 = arith.constant dense<0.000000e+00> : vector<2x8x8xf32>
    %61 = tpu.matmul %55, %59, %cst_16 {dimension_numbers = #tpu.dot_dimension_numbers<[2], [2], [1], [1], [0, 0, 0, 1, 1, 1], [0], [0]>} : vector<2x8x8xf32>, vector<2x8x8xf32>, vector<2x8x8xf32> -> vector<2x8x8xf32>
    "tpu.trace_stop"() : () -> ()
    %cst_17 = arith.constant 5.000000e-01 : f32
    %62 = vector.broadcast %cst_17 : f32 to vector<2x8x8xf32>
    %63 = arith.mulf %61, %62 : vector<2x8x8xf32>
    %cst_18 = arith.constant dense<0xFF800000> : vector<2x8xf32>
    %64 = vector.multi_reduction <maximumf>, %63, %cst_18 [2] : vector<2x8x8xf32> to vector<2x8xf32>
    %65 = vector.shape_cast %64 : vector<2x8xf32> to vector<2x8x1xf32>
    %66 = vector.broadcast %65 : vector<2x8x1xf32> to vector<2x8x8xf32>
    %67 = arith.subf %63, %66 : vector<2x8x8xf32>
    %68 = math.exp %67 : vector<2x8x8xf32>
    %cst_19 = arith.constant dense<0.000000e+00> : vector<2x8xf32>
    %69 = vector.multi_reduction <add>, %68, %cst_19 [2] : vector<2x8x8xf32> to vector<2x8xf32>
    %70 = vector.shape_cast %69 : vector<2x8xf32> to vector<2x8x1xf32>
    %71 = tpu.reciprocal %70 : vector<2x8x1xf32> -> vector<2x8x1xf32>
    %72 = vector.broadcast %71 : vector<2x8x1xf32> to vector<2x8x8xf32>
    %73 = arith.mulf %68, %72 : vector<2x8x8xf32>
    "tpu.trace_start"() <{level = 10 : i32, message = "bqk,bkd->bqd"}> : () -> ()
    %cst_20 = arith.constant dense<0.000000e+00> : vector<2x8x8xf32>
    %74 = tpu.matmul %73, %57, %cst_20 {dimension_numbers = #tpu.dot_dimension_numbers<[2], [1], [1], [2], [0, 0, 0, 1, 1, 2], [0], [0]>} : vector<2x8x8xf32>, vector<2x8x8xf32>, vector<2x8x8xf32> -> vector<2x8x8xf32>
    "tpu.trace_stop"() : () -> ()
    "tpu.trace_start"() <{level = 10 : i32, message = "bqd,bkd->bqk"}> : () -> ()
    %cst_21 = arith.constant dense<0.000000e+00> : vector<2x8x8xf32>
    %75 = tpu.matmul %58, %56, %cst_21 {dimension_numbers = #tpu.dot_dimension_numbers<[2], [2], [1], [1], [0, 0, 0, 1, 1, 1], [0], [0]>} : vector<2x8x8xf32>, vector<2x8x8xf32>, vector<2x8x8xf32> -> vector<2x8x8xf32>
    "tpu.trace_stop"() : () -> ()
    %cst_22 = arith.constant 5.000000e-01 : f32
    %76 = vector.broadcast %cst_22 : f32 to vector<2x8x8xf32>
    %77 = arith.mulf %75, %76 : vector<2x8x8xf32>
    %cst_23 = arith.constant dense<0xFF800000> : vector<2x8xf32>
    %78 = vector.multi_reduction <maximumf>, %77, %cst_23 [2] : vector<2x8x8xf32> to vector<2x8xf32>
    %79 = vector.shape_cast %78 : vector<2x8xf32> to vector<2x8x1xf32>
    %80 = vector.broadcast %79 : vector<2x8x1xf32> to vector<2x8x8xf32>
    %81 = arith.subf %77, %80 : vector<2x8x8xf32>
    %82 = math.exp %81 : vector<2x8x8xf32>
    %cst_24 = arith.constant dense<0.000000e+00> : vector<2x8xf32>
    %83 = vector.multi_reduction <add>, %82, %cst_24 [2] : vector<2x8x8xf32> to vector<2x8xf32>
    %84 = vector.shape_cast %83 : vector<2x8xf32> to vector<2x8x1xf32>
    %85 = tpu.reciprocal %84 : vector<2x8x1xf32> -> vector<2x8x1xf32>
    %86 = vector.broadcast %85 : vector<2x8x1xf32> to vector<2x8x8xf32>
    %87 = arith.mulf %82, %86 : vector<2x8x8xf32>
    "tpu.trace_start"() <{level = 10 : i32, message = "bqk,bkd->bqd"}> : () -> ()
    %cst_25 = arith.constant dense<0.000000e+00> : vector<2x8x8xf32>
    %88 = tpu.matmul %87, %60, %cst_25 {dimension_numbers = #tpu.dot_dimension_numbers<[2], [1], [1], [2], [0, 0, 0, 1, 1, 2], [0], [0]>} : vector<2x8x8xf32>, vector<2x8x8xf32>, vector<2x8x8xf32> -> vector<2x8x8xf32>
    "tpu.trace_stop"() : () -> ()
    %89 = vector.extract_strided_slice %15 {offsets = [0, 0, 16], sizes = [2, 8, 8], strides = [1, 1, 1]} : vector<2x8x32xf32> to vector<2x8x8xf32>
    %90 = vector.extract_strided_slice %16 {offsets = [0, 0, 16], sizes = [2, 8, 8], strides = [1, 1, 1]} : vector<2x8x32xf32> to vector<2x8x8xf32>
    %91 = vector.extract_strided_slice %17 {offsets = [0, 0, 16], sizes = [2, 8, 8], strides = [1, 1, 1]} : vector<2x8x32xf32> to vector<2x8x8xf32>
    %92 = vector.extract_strided_slice %18 {offsets = [0, 0, 16], sizes = [2, 8, 8], strides = [1, 1, 1]} : vector<2x8x32xf32> to vector<2x8x8xf32>
    %93 = vector.extract_strided_slice %19 {offsets = [0, 0, 16], sizes = [2, 8, 8], strides = [1, 1, 1]} : vector<2x8x32xf32> to vector<2x8x8xf32>
    %94 = vector.extract_strided_slice %20 {offsets = [0, 0, 16], sizes = [2, 8, 8], strides = [1, 1, 1]} : vector<2x8x32xf32> to vector<2x8x8xf32>
    "tpu.trace_start"() <{level = 10 : i32, message = "bqd,bkd->bqk"}> : () -> ()
    %cst_26 = arith.constant dense<0.000000e+00> : vector<2x8x8xf32>
    %95 = tpu.matmul %89, %93, %cst_26 {dimension_numbers = #tpu.dot_dimension_numbers<[2], [2], [1], [1], [0, 0, 0, 1, 1, 1], [0], [0]>} : vector<2x8x8xf32>, vector<2x8x8xf32>, vector<2x8x8xf32> -> vector<2x8x8xf32>
    "tpu.trace_stop"() : () -> ()
    %cst_27 = arith.constant 5.000000e-01 : f32
    %96 = vector.broadcast %cst_27 : f32 to vector<2x8x8xf32>
    %97 = arith.mulf %95, %96 : vector<2x8x8xf32>
    %cst_28 = arith.constant dense<0xFF800000> : vector<2x8xf32>
    %98 = vector.multi_reduction <maximumf>, %97, %cst_28 [2] : vector<2x8x8xf32> to vector<2x8xf32>
    %99 = vector.shape_cast %98 : vector<2x8xf32> to vector<2x8x1xf32>
    %100 = vector.broadcast %99 : vector<2x8x1xf32> to vector<2x8x8xf32>
    %101 = arith.subf %97, %100 : vector<2x8x8xf32>
    %102 = math.exp %101 : vector<2x8x8xf32>
    %cst_29 = arith.constant dense<0.000000e+00> : vector<2x8xf32>
    %103 = vector.multi_reduction <add>, %102, %cst_29 [2] : vector<2x8x8xf32> to vector<2x8xf32>
    %104 = vector.shape_cast %103 : vector<2x8xf32> to vector<2x8x1xf32>
    %105 = tpu.reciprocal %104 : vector<2x8x1xf32> -> vector<2x8x1xf32>
    %106 = vector.broadcast %105 : vector<2x8x1xf32> to vector<2x8x8xf32>
    %107 = arith.mulf %102, %106 : vector<2x8x8xf32>
    "tpu.trace_start"() <{level = 10 : i32, message = "bqk,bkd->bqd"}> : () -> ()
    %cst_30 = arith.constant dense<0.000000e+00> : vector<2x8x8xf32>
    %108 = tpu.matmul %107, %91, %cst_30 {dimension_numbers = #tpu.dot_dimension_numbers<[2], [1], [1], [2], [0, 0, 0, 1, 1, 2], [0], [0]>} : vector<2x8x8xf32>, vector<2x8x8xf32>, vector<2x8x8xf32> -> vector<2x8x8xf32>
    "tpu.trace_stop"() : () -> ()
    "tpu.trace_start"() <{level = 10 : i32, message = "bqd,bkd->bqk"}> : () -> ()
    %cst_31 = arith.constant dense<0.000000e+00> : vector<2x8x8xf32>
    %109 = tpu.matmul %92, %90, %cst_31 {dimension_numbers = #tpu.dot_dimension_numbers<[2], [2], [1], [1], [0, 0, 0, 1, 1, 1], [0], [0]>} : vector<2x8x8xf32>, vector<2x8x8xf32>, vector<2x8x8xf32> -> vector<2x8x8xf32>
    "tpu.trace_stop"() : () -> ()
    %cst_32 = arith.constant 5.000000e-01 : f32
    %110 = vector.broadcast %cst_32 : f32 to vector<2x8x8xf32>
    %111 = arith.mulf %109, %110 : vector<2x8x8xf32>
    %cst_33 = arith.constant dense<0xFF800000> : vector<2x8xf32>
    %112 = vector.multi_reduction <maximumf>, %111, %cst_33 [2] : vector<2x8x8xf32> to vector<2x8xf32>
    %113 = vector.shape_cast %112 : vector<2x8xf32> to vector<2x8x1xf32>
    %114 = vector.broadcast %113 : vector<2x8x1xf32> to vector<2x8x8xf32>
    %115 = arith.subf %111, %114 : vector<2x8x8xf32>
    %116 = math.exp %115 : vector<2x8x8xf32>
    %cst_34 = arith.constant dense<0.000000e+00> : vector<2x8xf32>
    %117 = vector.multi_reduction <add>, %116, %cst_34 [2] : vector<2x8x8xf32> to vector<2x8xf32>
    %118 = vector.shape_cast %117 : vector<2x8xf32> to vector<2x8x1xf32>
    %119 = tpu.reciprocal %118 : vector<2x8x1xf32> -> vector<2x8x1xf32>
    %120 = vector.broadcast %119 : vector<2x8x1xf32> to vector<2x8x8xf32>
    %121 = arith.mulf %116, %120 : vector<2x8x8xf32>
    "tpu.trace_start"() <{level = 10 : i32, message = "bqk,bkd->bqd"}> : () -> ()
    %cst_35 = arith.constant dense<0.000000e+00> : vector<2x8x8xf32>
    %122 = tpu.matmul %121, %94, %cst_35 {dimension_numbers = #tpu.dot_dimension_numbers<[2], [1], [1], [2], [0, 0, 0, 1, 1, 2], [0], [0]>} : vector<2x8x8xf32>, vector<2x8x8xf32>, vector<2x8x8xf32> -> vector<2x8x8xf32>
    "tpu.trace_stop"() : () -> ()
    %123 = vector.extract_strided_slice %15 {offsets = [0, 0, 24], sizes = [2, 8, 8], strides = [1, 1, 1]} : vector<2x8x32xf32> to vector<2x8x8xf32>
    %124 = vector.extract_strided_slice %16 {offsets = [0, 0, 24], sizes = [2, 8, 8], strides = [1, 1, 1]} : vector<2x8x32xf32> to vector<2x8x8xf32>
    %125 = vector.extract_strided_slice %17 {offsets = [0, 0, 24], sizes = [2, 8, 8], strides = [1, 1, 1]} : vector<2x8x32xf32> to vector<2x8x8xf32>
    %126 = vector.extract_strided_slice %18 {offsets = [0, 0, 24], sizes = [2, 8, 8], strides = [1, 1, 1]} : vector<2x8x32xf32> to vector<2x8x8xf32>
    %127 = vector.extract_strided_slice %19 {offsets = [0, 0, 24], sizes = [2, 8, 8], strides = [1, 1, 1]} : vector<2x8x32xf32> to vector<2x8x8xf32>
    %128 = vector.extract_strided_slice %20 {offsets = [0, 0, 24], sizes = [2, 8, 8], strides = [1, 1, 1]} : vector<2x8x32xf32> to vector<2x8x8xf32>
    "tpu.trace_start"() <{level = 10 : i32, message = "bqd,bkd->bqk"}> : () -> ()
    %cst_36 = arith.constant dense<0.000000e+00> : vector<2x8x8xf32>
    %129 = tpu.matmul %123, %127, %cst_36 {dimension_numbers = #tpu.dot_dimension_numbers<[2], [2], [1], [1], [0, 0, 0, 1, 1, 1], [0], [0]>} : vector<2x8x8xf32>, vector<2x8x8xf32>, vector<2x8x8xf32> -> vector<2x8x8xf32>
    "tpu.trace_stop"() : () -> ()
    %cst_37 = arith.constant 5.000000e-01 : f32
    %130 = vector.broadcast %cst_37 : f32 to vector<2x8x8xf32>
    %131 = arith.mulf %129, %130 : vector<2x8x8xf32>
    %cst_38 = arith.constant dense<0xFF800000> : vector<2x8xf32>
    %132 = vector.multi_reduction <maximumf>, %131, %cst_38 [2] : vector<2x8x8xf32> to vector<2x8xf32>
    %133 = vector.shape_cast %132 : vector<2x8xf32> to vector<2x8x1xf32>
    %134 = vector.broadcast %133 : vector<2x8x1xf32> to vector<2x8x8xf32>
    %135 = arith.subf %131, %134 : vector<2x8x8xf32>
    %136 = math.exp %135 : vector<2x8x8xf32>
    %cst_39 = arith.constant dense<0.000000e+00> : vector<2x8xf32>
    %137 = vector.multi_reduction <add>, %136, %cst_39 [2] : vector<2x8x8xf32> to vector<2x8xf32>
    %138 = vector.shape_cast %137 : vector<2x8xf32> to vector<2x8x1xf32>
    %139 = tpu.reciprocal %138 : vector<2x8x1xf32> -> vector<2x8x1xf32>
    %140 = vector.broadcast %139 : vector<2x8x1xf32> to vector<2x8x8xf32>
    %141 = arith.mulf %136, %140 : vector<2x8x8xf32>
    "tpu.trace_start"() <{level = 10 : i32, message = "bqk,bkd->bqd"}> : () -> ()
    %cst_40 = arith.constant dense<0.000000e+00> : vector<2x8x8xf32>
    %142 = tpu.matmul %141, %125, %cst_40 {dimension_numbers = #tpu.dot_dimension_numbers<[2], [1], [1], [2], [0, 0, 0, 1, 1, 2], [0], [0]>} : vector<2x8x8xf32>, vector<2x8x8xf32>, vector<2x8x8xf32> -> vector<2x8x8xf32>
    "tpu.trace_stop"() : () -> ()
    "tpu.trace_start"() <{level = 10 : i32, message = "bqd,bkd->bqk"}> : () -> ()
    %cst_41 = arith.constant dense<0.000000e+00> : vector<2x8x8xf32>
    %143 = tpu.matmul %126, %124, %cst_41 {dimension_numbers = #tpu.dot_dimension_numbers<[2], [2], [1], [1], [0, 0, 0, 1, 1, 1], [0], [0]>} : vector<2x8x8xf32>, vector<2x8x8xf32>, vector<2x8x8xf32> -> vector<2x8x8xf32>
    "tpu.trace_stop"() : () -> ()
    %cst_42 = arith.constant 5.000000e-01 : f32
    %144 = vector.broadcast %cst_42 : f32 to vector<2x8x8xf32>
    %145 = arith.mulf %143, %144 : vector<2x8x8xf32>
    %cst_43 = arith.constant dense<0xFF800000> : vector<2x8xf32>
    %146 = vector.multi_reduction <maximumf>, %145, %cst_43 [2] : vector<2x8x8xf32> to vector<2x8xf32>
    %147 = vector.shape_cast %146 : vector<2x8xf32> to vector<2x8x1xf32>
    %148 = vector.broadcast %147 : vector<2x8x1xf32> to vector<2x8x8xf32>
    %149 = arith.subf %145, %148 : vector<2x8x8xf32>
    %150 = math.exp %149 : vector<2x8x8xf32>
    %cst_44 = arith.constant dense<0.000000e+00> : vector<2x8xf32>
    %151 = vector.multi_reduction <add>, %150, %cst_44 [2] : vector<2x8x8xf32> to vector<2x8xf32>
    %152 = vector.shape_cast %151 : vector<2x8xf32> to vector<2x8x1xf32>
    %153 = tpu.reciprocal %152 : vector<2x8x1xf32> -> vector<2x8x1xf32>
    %154 = vector.broadcast %153 : vector<2x8x1xf32> to vector<2x8x8xf32>
    %155 = arith.mulf %150, %154 : vector<2x8x8xf32>
    "tpu.trace_start"() <{level = 10 : i32, message = "bqk,bkd->bqd"}> : () -> ()
    %cst_45 = arith.constant dense<0.000000e+00> : vector<2x8x8xf32>
    %156 = tpu.matmul %155, %128, %cst_45 {dimension_numbers = #tpu.dot_dimension_numbers<[2], [1], [1], [2], [0, 0, 0, 1, 1, 2], [0], [0]>} : vector<2x8x8xf32>, vector<2x8x8xf32>, vector<2x8x8xf32> -> vector<2x8x8xf32>
    "tpu.trace_stop"() : () -> ()
    %157 = tpu.concatenate %40, %74, %108, %142 in 2 : vector<2x8x8xf32>, vector<2x8x8xf32>, vector<2x8x8xf32>, vector<2x8x8xf32> -> vector<2x8x32xf32>
    %158 = tpu.concatenate %54, %88, %122, %156 in 2 : vector<2x8x8xf32>, vector<2x8x8xf32>, vector<2x8x8xf32>, vector<2x8x8xf32> -> vector<2x8x32xf32>
    %159 = tpu.concatenate %157, %158 in 1 : vector<2x8x32xf32>, vector<2x8x32xf32> -> vector<2x16x32xf32>
    %160 = vector.extract_strided_slice %159 {offsets = [0, 0, 31], sizes = [2, 16, 1], strides = [1, 1, 1]} : vector<2x16x32xf32> to vector<2x16x1xf32>
    %161 = vector.extract_strided_slice %159 {offsets = [0, 0, 0], sizes = [2, 16, 31], strides = [1, 1, 1]} : vector<2x16x32xf32> to vector<2x16x31xf32>
    %162 = tpu.concatenate %160, %161 in 2 : vector<2x16x1xf32>, vector<2x16x31xf32> -> vector<2x16x32xf32>
    %163 = vector.extract_strided_slice %159 {offsets = [0, 0, 1], sizes = [2, 16, 31], strides = [1, 1, 1]} : vector<2x16x32xf32> to vector<2x16x31xf32>
    %164 = vector.extract_strided_slice %159 {offsets = [0, 0, 0], sizes = [2, 16, 1], strides = [1, 1, 1]} : vector<2x16x32xf32> to vector<2x16x1xf32>
    %165 = tpu.concatenate %163, %164 in 2 : vector<2x16x31xf32>, vector<2x16x1xf32> -> vector<2x16x32xf32>
    %166 = tpu.concatenate %162, %159, %165 in 1 : vector<2x16x32xf32>, vector<2x16x32xf32>, vector<2x16x32xf32> -> vector<2x48x32xf32>
    %c0_46 = arith.constant 0 : index
    %c0_47 = arith.constant 0 : index
    %167 = vector.load %arg4[%c0_46, %c0_47] : memref<8x48xf32, #tpu.memory_space<vmem>>, vector<8x48xf32>
    %168 = vector.shape_cast %167 : vector<8x48xf32> to vector<1x8x48xf32>
    %169 = vector.broadcast %168 : vector<1x8x48xf32> to vector<2x8x48xf32>
    "tpu.trace_start"() <{level = 10 : i32, message = "bok,bkd->bod"}> : () -> ()
    %cst_48 = arith.constant dense<0.000000e+00> : vector<2x8x32xf32>
    %170 = tpu.matmul %169, %166, %cst_48 {dimension_numbers = #tpu.dot_dimension_numbers<[2], [1], [1], [2], [0, 0, 0, 1, 1, 2], [0], [0]>} : vector<2x8x48xf32>, vector<2x48x32xf32>, vector<2x8x32xf32> -> vector<2x8x32xf32>
    "tpu.trace_stop"() : () -> ()
    %c0_49 = arith.constant 0 : index
    %c0_50 = arith.constant 0 : index
    %171 = vector.load %arg5[%c0_49, %c0_50] : memref<8x1xf32, #tpu.memory_space<vmem>>, vector<8x1xf32>
    %172 = vector.shape_cast %171 : vector<8x1xf32> to vector<1x8x1xf32>
    %173 = vector.broadcast %172 : vector<1x8x1xf32> to vector<2x8x32xf32>
    %174 = arith.addf %170, %173 : vector<2x8x32xf32>
    %c0_51 = arith.constant 0 : index
    %c0_52 = arith.constant 0 : index
    %175 = vector.load %arg6[%c0_51, %c0_52] : memref<96x32xf32, #tpu.memory_space<vmem>>, vector<96x32xf32>
    %c0_53 = arith.constant 0 : index
    %c0_54 = arith.constant 0 : index
    %176 = vector.load %arg7[%c0_53, %c0_54] : memref<1x32xf32, #tpu.memory_space<vmem>>, vector<1x32xf32>
    %177 = vector.extract_strided_slice %174 {offsets = [0, 7, 0], sizes = [2, 1, 32], strides = [1, 1, 1]} : vector<2x8x32xf32> to vector<2x1x32xf32>
    %178 = vector.extract_strided_slice %174 {offsets = [0, 0, 0], sizes = [2, 7, 32], strides = [1, 1, 1]} : vector<2x8x32xf32> to vector<2x7x32xf32>
    %179 = tpu.concatenate %177, %178 in 1 : vector<2x1x32xf32>, vector<2x7x32xf32> -> vector<2x8x32xf32>
    %180 = vector.extract_strided_slice %174 {offsets = [0, 1, 0], sizes = [2, 7, 32], strides = [1, 1, 1]} : vector<2x8x32xf32> to vector<2x7x32xf32>
    %181 = vector.extract_strided_slice %174 {offsets = [0, 0, 0], sizes = [2, 1, 32], strides = [1, 1, 1]} : vector<2x8x32xf32> to vector<2x1x32xf32>
    %182 = tpu.concatenate %180, %181 in 1 : vector<2x7x32xf32>, vector<2x1x32xf32> -> vector<2x8x32xf32>
    %183 = tpu.concatenate %179, %174, %182 in 2 : vector<2x8x32xf32>, vector<2x8x32xf32>, vector<2x8x32xf32> -> vector<2x8x96xf32>
    %184 = vector.shape_cast %183 : vector<2x8x96xf32> to vector<16x96xf32>
    %cst_55 = arith.constant dense<0.000000e+00> : vector<16x32xf32>
    %185 = tpu.matmul %184, %175, %cst_55 {dimension_numbers = #tpu.dot_dimension_numbers<[1], [0], [0], [1], [0, 0, 1, 1], [], []>} : vector<16x96xf32>, vector<96x32xf32>, vector<16x32xf32> -> vector<16x32xf32>
    %186 = vector.broadcast %176 : vector<1x32xf32> to vector<16x32xf32>
    %187 = arith.addf %185, %186 : vector<16x32xf32>
    %188 = vector.shape_cast %187 : vector<16x32xf32> to vector<2x8x32xf32>
    %cst_56 = arith.constant 0.000000e+00 : f32
    %189 = vector.broadcast %cst_56 : f32 to vector<2x8x32xf32>
    %190 = arith.maximumf %188, %189 : vector<2x8x32xf32>
    %c0_57 = arith.constant 0 : index
    %c0_58 = arith.constant 0 : index
    %191 = vector.load %arg8[%c0_57, %c0_58] : memref<96x16xf32, #tpu.memory_space<vmem>>, vector<96x16xf32>
    %c0_59 = arith.constant 0 : index
    %c0_60 = arith.constant 0 : index
    %192 = vector.load %arg9[%c0_59, %c0_60] : memref<1x16xf32, #tpu.memory_space<vmem>>, vector<1x16xf32>
    %193 = vector.extract_strided_slice %190 {offsets = [0, 7, 0], sizes = [2, 1, 32], strides = [1, 1, 1]} : vector<2x8x32xf32> to vector<2x1x32xf32>
    %194 = vector.extract_strided_slice %190 {offsets = [0, 0, 0], sizes = [2, 7, 32], strides = [1, 1, 1]} : vector<2x8x32xf32> to vector<2x7x32xf32>
    %195 = tpu.concatenate %193, %194 in 1 : vector<2x1x32xf32>, vector<2x7x32xf32> -> vector<2x8x32xf32>
    %196 = vector.extract_strided_slice %190 {offsets = [0, 1, 0], sizes = [2, 7, 32], strides = [1, 1, 1]} : vector<2x8x32xf32> to vector<2x7x32xf32>
    %197 = vector.extract_strided_slice %190 {offsets = [0, 0, 0], sizes = [2, 1, 32], strides = [1, 1, 1]} : vector<2x8x32xf32> to vector<2x1x32xf32>
    %198 = tpu.concatenate %196, %197 in 1 : vector<2x7x32xf32>, vector<2x1x32xf32> -> vector<2x8x32xf32>
    %199 = tpu.concatenate %195, %190, %198 in 2 : vector<2x8x32xf32>, vector<2x8x32xf32>, vector<2x8x32xf32> -> vector<2x8x96xf32>
    %200 = vector.shape_cast %199 : vector<2x8x96xf32> to vector<16x96xf32>
    %cst_61 = arith.constant dense<0.000000e+00> : vector<16x16xf32>
    %201 = tpu.matmul %200, %191, %cst_61 {dimension_numbers = #tpu.dot_dimension_numbers<[1], [0], [0], [1], [0, 0, 1, 1], [], []>} : vector<16x96xf32>, vector<96x16xf32>, vector<16x16xf32> -> vector<16x16xf32>
    %202 = vector.broadcast %192 : vector<1x16xf32> to vector<16x16xf32>
    %203 = arith.addf %201, %202 : vector<16x16xf32>
    %204 = vector.shape_cast %203 : vector<16x16xf32> to vector<2x8x16xf32>
    %c0_62 = arith.constant 0 : index
    %c0_63 = arith.constant 0 : index
    %205 = vector.load %arg10[%c0_62, %c0_63] : memref<1x16xf32, #tpu.memory_space<vmem>>, vector<1x16xf32>
    %c0_64 = arith.constant 0 : index
    %c0_65 = arith.constant 0 : index
    %206 = vector.load %arg11[%c0_64, %c0_65] : memref<1x16xf32, #tpu.memory_space<vmem>>, vector<1x16xf32>
    %cst_66 = arith.constant dense<0.000000e+00> : vector<2x8xf32>
    %207 = vector.multi_reduction <add>, %204, %cst_66 [2] : vector<2x8x16xf32> to vector<2x8xf32>
    %208 = vector.shape_cast %207 : vector<2x8xf32> to vector<2x8x1xf32>
    %cst_67 = arith.constant 1.600000e+01 : f32
    %209 = vector.broadcast %cst_67 : f32 to vector<2x8x1xf32>
    %210 = arith.divf %208, %209 : vector<2x8x1xf32>
    %211 = vector.broadcast %210 : vector<2x8x1xf32> to vector<2x8x16xf32>
    %212 = arith.subf %204, %211 : vector<2x8x16xf32>
    %213 = arith.mulf %212, %212 : vector<2x8x16xf32>
    %cst_68 = arith.constant dense<0.000000e+00> : vector<2x8xf32>
    %214 = vector.multi_reduction <add>, %213, %cst_68 [2] : vector<2x8x16xf32> to vector<2x8xf32>
    %215 = vector.shape_cast %214 : vector<2x8xf32> to vector<2x8x1xf32>
    %cst_69 = arith.constant 1.600000e+01 : f32
    %216 = vector.broadcast %cst_69 : f32 to vector<2x8x1xf32>
    %217 = arith.divf %215, %216 : vector<2x8x1xf32>
    %218 = vector.broadcast %210 : vector<2x8x1xf32> to vector<2x8x16xf32>
    %219 = arith.subf %204, %218 : vector<2x8x16xf32>
    %cst_70 = arith.constant 9.99999974E-6 : f32
    %220 = vector.broadcast %cst_70 : f32 to vector<2x8x1xf32>
    %221 = arith.addf %217, %220 : vector<2x8x1xf32>
    %222 = math.rsqrt %221 : vector<2x8x1xf32>
    %223 = vector.broadcast %222 : vector<2x8x1xf32> to vector<2x8x16xf32>
    %224 = arith.mulf %219, %223 : vector<2x8x16xf32>
    %225 = vector.shape_cast %205 : vector<1x16xf32> to vector<1x1x16xf32>
    %226 = vector.broadcast %225 : vector<1x1x16xf32> to vector<2x8x16xf32>
    %227 = arith.mulf %224, %226 : vector<2x8x16xf32>
    %228 = vector.shape_cast %206 : vector<1x16xf32> to vector<1x1x16xf32>
    %229 = vector.broadcast %228 : vector<1x1x16xf32> to vector<2x8x16xf32>
    %230 = arith.addf %227, %229 : vector<2x8x16xf32>
    %c0_71 = arith.constant 0 : index
    %c0_72 = arith.constant 0 : index
    %231 = vector.load %arg12[%c0_71, %c0_72] : memref<48x32xf32, #tpu.memory_space<vmem>>, vector<48x32xf32>
    %c0_73 = arith.constant 0 : index
    %c0_74 = arith.constant 0 : index
    %232 = vector.load %arg13[%c0_73, %c0_74] : memref<1x32xf32, #tpu.memory_space<vmem>>, vector<1x32xf32>
    %233 = vector.extract_strided_slice %230 {offsets = [0, 7, 0], sizes = [2, 1, 16], strides = [1, 1, 1]} : vector<2x8x16xf32> to vector<2x1x16xf32>
    %234 = vector.extract_strided_slice %230 {offsets = [0, 0, 0], sizes = [2, 7, 16], strides = [1, 1, 1]} : vector<2x8x16xf32> to vector<2x7x16xf32>
    %235 = tpu.concatenate %233, %234 in 1 : vector<2x1x16xf32>, vector<2x7x16xf32> -> vector<2x8x16xf32>
    %236 = vector.extract_strided_slice %230 {offsets = [0, 1, 0], sizes = [2, 7, 16], strides = [1, 1, 1]} : vector<2x8x16xf32> to vector<2x7x16xf32>
    %237 = vector.extract_strided_slice %230 {offsets = [0, 0, 0], sizes = [2, 1, 16], strides = [1, 1, 1]} : vector<2x8x16xf32> to vector<2x1x16xf32>
    %238 = tpu.concatenate %236, %237 in 1 : vector<2x7x16xf32>, vector<2x1x16xf32> -> vector<2x8x16xf32>
    %239 = tpu.concatenate %235, %230, %238 in 2 : vector<2x8x16xf32>, vector<2x8x16xf32>, vector<2x8x16xf32> -> vector<2x8x48xf32>
    %240 = vector.shape_cast %239 : vector<2x8x48xf32> to vector<16x48xf32>
    %cst_75 = arith.constant dense<0.000000e+00> : vector<16x32xf32>
    %241 = tpu.matmul %240, %231, %cst_75 {dimension_numbers = #tpu.dot_dimension_numbers<[1], [0], [0], [1], [0, 0, 1, 1], [], []>} : vector<16x48xf32>, vector<48x32xf32>, vector<16x32xf32> -> vector<16x32xf32>
    %242 = vector.broadcast %232 : vector<1x32xf32> to vector<16x32xf32>
    %243 = arith.addf %241, %242 : vector<16x32xf32>
    %244 = vector.shape_cast %243 : vector<16x32xf32> to vector<2x8x32xf32>
    %cst_76 = arith.constant 0.000000e+00 : f32
    %245 = vector.broadcast %cst_76 : f32 to vector<2x8x32xf32>
    %246 = arith.maximumf %244, %245 : vector<2x8x32xf32>
    %c0_77 = arith.constant 0 : index
    %c0_78 = arith.constant 0 : index
    %247 = vector.load %arg14[%c0_77, %c0_78] : memref<96x32xf32, #tpu.memory_space<vmem>>, vector<96x32xf32>
    %c0_79 = arith.constant 0 : index
    %c0_80 = arith.constant 0 : index
    %248 = vector.load %arg15[%c0_79, %c0_80] : memref<1x32xf32, #tpu.memory_space<vmem>>, vector<1x32xf32>
    %249 = vector.extract_strided_slice %246 {offsets = [0, 7, 0], sizes = [2, 1, 32], strides = [1, 1, 1]} : vector<2x8x32xf32> to vector<2x1x32xf32>
    %250 = vector.extract_strided_slice %246 {offsets = [0, 0, 0], sizes = [2, 7, 32], strides = [1, 1, 1]} : vector<2x8x32xf32> to vector<2x7x32xf32>
    %251 = tpu.concatenate %249, %250 in 1 : vector<2x1x32xf32>, vector<2x7x32xf32> -> vector<2x8x32xf32>
    %252 = vector.extract_strided_slice %246 {offsets = [0, 1, 0], sizes = [2, 7, 32], strides = [1, 1, 1]} : vector<2x8x32xf32> to vector<2x7x32xf32>
    %253 = vector.extract_strided_slice %246 {offsets = [0, 0, 0], sizes = [2, 1, 32], strides = [1, 1, 1]} : vector<2x8x32xf32> to vector<2x1x32xf32>
    %254 = tpu.concatenate %252, %253 in 1 : vector<2x7x32xf32>, vector<2x1x32xf32> -> vector<2x8x32xf32>
    %255 = tpu.concatenate %251, %246, %254 in 2 : vector<2x8x32xf32>, vector<2x8x32xf32>, vector<2x8x32xf32> -> vector<2x8x96xf32>
    %256 = vector.shape_cast %255 : vector<2x8x96xf32> to vector<16x96xf32>
    %cst_81 = arith.constant dense<0.000000e+00> : vector<16x32xf32>
    %257 = tpu.matmul %256, %247, %cst_81 {dimension_numbers = #tpu.dot_dimension_numbers<[1], [0], [0], [1], [0, 0, 1, 1], [], []>} : vector<16x96xf32>, vector<96x32xf32>, vector<16x32xf32> -> vector<16x32xf32>
    %258 = vector.broadcast %248 : vector<1x32xf32> to vector<16x32xf32>
    %259 = arith.addf %257, %258 : vector<16x32xf32>
    %260 = vector.shape_cast %259 : vector<16x32xf32> to vector<2x8x32xf32>
    %c0_82 = arith.constant 0 : index
    %c0_83 = arith.constant 0 : index
    %261 = vector.load %arg16[%c0_82, %c0_83] : memref<1x32xf32, #tpu.memory_space<vmem>>, vector<1x32xf32>
    %c0_84 = arith.constant 0 : index
    %c0_85 = arith.constant 0 : index
    %262 = vector.load %arg17[%c0_84, %c0_85] : memref<1x32xf32, #tpu.memory_space<vmem>>, vector<1x32xf32>
    %cst_86 = arith.constant dense<0.000000e+00> : vector<2x8xf32>
    %263 = vector.multi_reduction <add>, %260, %cst_86 [2] : vector<2x8x32xf32> to vector<2x8xf32>
    %264 = vector.shape_cast %263 : vector<2x8xf32> to vector<2x8x1xf32>
    %cst_87 = arith.constant 3.200000e+01 : f32
    %265 = vector.broadcast %cst_87 : f32 to vector<2x8x1xf32>
    %266 = arith.divf %264, %265 : vector<2x8x1xf32>
    %267 = vector.broadcast %266 : vector<2x8x1xf32> to vector<2x8x32xf32>
    %268 = arith.subf %260, %267 : vector<2x8x32xf32>
    %269 = arith.mulf %268, %268 : vector<2x8x32xf32>
    %cst_88 = arith.constant dense<0.000000e+00> : vector<2x8xf32>
    %270 = vector.multi_reduction <add>, %269, %cst_88 [2] : vector<2x8x32xf32> to vector<2x8xf32>
    %271 = vector.shape_cast %270 : vector<2x8xf32> to vector<2x8x1xf32>
    %cst_89 = arith.constant 3.200000e+01 : f32
    %272 = vector.broadcast %cst_89 : f32 to vector<2x8x1xf32>
    %273 = arith.divf %271, %272 : vector<2x8x1xf32>
    %274 = vector.broadcast %266 : vector<2x8x1xf32> to vector<2x8x32xf32>
    %275 = arith.subf %260, %274 : vector<2x8x32xf32>
    %cst_90 = arith.constant 9.99999974E-6 : f32
    %276 = vector.broadcast %cst_90 : f32 to vector<2x8x1xf32>
    %277 = arith.addf %273, %276 : vector<2x8x1xf32>
    %278 = math.rsqrt %277 : vector<2x8x1xf32>
    %279 = vector.broadcast %278 : vector<2x8x1xf32> to vector<2x8x32xf32>
    %280 = arith.mulf %275, %279 : vector<2x8x32xf32>
    %281 = vector.shape_cast %261 : vector<1x32xf32> to vector<1x1x32xf32>
    %282 = vector.broadcast %281 : vector<1x1x32xf32> to vector<2x8x32xf32>
    %283 = arith.mulf %280, %282 : vector<2x8x32xf32>
    %284 = vector.shape_cast %262 : vector<1x32xf32> to vector<1x1x32xf32>
    %285 = vector.broadcast %284 : vector<1x1x32xf32> to vector<2x8x32xf32>
    %286 = arith.addf %283, %285 : vector<2x8x32xf32>
    %287 = arith.addf %286, %0 : vector<2x8x32xf32>
    %c0_91 = arith.constant 0 : index
    %c0_92 = arith.constant 0 : index
    %c0_93 = arith.constant 0 : index
    %288 = vector.load %arg18[%c0_91, %c0_92, %c0_93] : memref<2x8x32xf32, #tpu.memory_space<vmem>>, vector<2x8x32xf32>
    tpu.vector_store %arg18[%c0_91, %c0_92, %c0_93], %287 {strides = array<i32>} : memref<2x8x32xf32, #tpu.memory_space<vmem>>, vector<2x8x32xf32>,
    return
  }
  func.func @transform_0(%arg0: i32) -> (i32, i32, i32) {
    %c0_i32 = arith.constant 0 : i32
    %c0_i32_0 = arith.constant 0 : i32
    %c0_i32_1 = arith.constant 0 : i32
    return %arg0, %c0_i32, %c0_i32_0 : i32, i32, i32
  }
  func.func @transform_1(%arg0: i32) -> (i32, i32) {
    %c0_i32 = arith.constant 0 : i32
    %c0_i32_0 = arith.constant 0 : i32
    %c0_i32_1 = arith.constant 0 : i32
    return %c0_i32, %c0_i32_0 : i32, i32
  }
  func.func @transform_2(%arg0: i32) -> (i32, i32) {
    %c0_i32 = arith.constant 0 : i32
    %c0_i32_0 = arith.constant 0 : i32
    %c0_i32_1 = arith.constant 0 : i32
    return %c0_i32, %c0_i32_0 : i32, i32
  }
  func.func @transform_3(%arg0: i32) -> (i32, i32) {
    %c0_i32 = arith.constant 0 : i32
    %c0_i32_0 = arith.constant 0 : i32
    %c0_i32_1 = arith.constant 0 : i32
    return %c0_i32, %c0_i32_0 : i32, i32
  }
  func.func @transform_4(%arg0: i32) -> (i32, i32) {
    %c0_i32 = arith.constant 0 : i32
    %c0_i32_0 = arith.constant 0 : i32
    %c0_i32_1 = arith.constant 0 : i32
    return %c0_i32, %c0_i32_0 : i32, i32
  }
  func.func @transform_5(%arg0: i32) -> (i32, i32) {
    %c0_i32 = arith.constant 0 : i32
    %c0_i32_0 = arith.constant 0 : i32
    %c0_i32_1 = arith.constant 0 : i32
    return %c0_i32, %c0_i32_0 : i32, i32
  }
  func.func @transform_6(%arg0: i32) -> (i32, i32) {
    %c0_i32 = arith.constant 0 : i32
    %c0_i32_0 = arith.constant 0 : i32
    %c0_i32_1 = arith.constant 0 : i32
    return %c0_i32, %c0_i32_0 : i32, i32
  }
  func.func @transform_7(%arg0: i32) -> (i32, i32) {
    %c0_i32 = arith.constant 0 : i32
    %c0_i32_0 = arith.constant 0 : i32
    %c0_i32_1 = arith.constant 0 : i32
    return %c0_i32, %c0_i32_0 : i32, i32
  }
  func.func @transform_8(%arg0: i32) -> (i32, i32) {
    %c0_i32 = arith.constant 0 : i32
    %c0_i32_0 = arith.constant 0 : i32
    %c0_i32_1 = arith.constant 0 : i32
    return %c0_i32, %c0_i32_0 : i32, i32
  }
  func.func @transform_9(%arg0: i32) -> (i32, i32) {
    %c0_i32 = arith.constant 0 : i32
    %c0_i32_0 = arith.constant 0 : i32
    %c0_i32_1 = arith.constant 0 : i32
    return %c0_i32, %c0_i32_0 : i32, i32
  }
  func.func @transform_10(%arg0: i32) -> (i32, i32) {
    %c0_i32 = arith.constant 0 : i32
    %c0_i32_0 = arith.constant 0 : i32
    %c0_i32_1 = arith.constant 0 : i32
    return %c0_i32, %c0_i32_0 : i32, i32
  }
  func.func @transform_11(%arg0: i32) -> (i32, i32) {
    %c0_i32 = arith.constant 0 : i32
    %c0_i32_0 = arith.constant 0 : i32
    %c0_i32_1 = arith.constant 0 : i32
    return %c0_i32, %c0_i32_0 : i32, i32
  }
  func.func @transform_12(%arg0: i32) -> (i32, i32) {
    %c0_i32 = arith.constant 0 : i32
    %c0_i32_0 = arith.constant 0 : i32
    %c0_i32_1 = arith.constant 0 : i32
    return %c0_i32, %c0_i32_0 : i32, i32
  }
  func.func @transform_13(%arg0: i32) -> (i32, i32) {
    %c0_i32 = arith.constant 0 : i32
    %c0_i32_0 = arith.constant 0 : i32
    %c0_i32_1 = arith.constant 0 : i32
    return %c0_i32, %c0_i32_0 : i32, i32
  }
  func.func @transform_14(%arg0: i32) -> (i32, i32) {
    %c0_i32 = arith.constant 0 : i32
    %c0_i32_0 = arith.constant 0 : i32
    %c0_i32_1 = arith.constant 0 : i32
    return %c0_i32, %c0_i32_0 : i32, i32
  }
  func.func @transform_15(%arg0: i32) -> (i32, i32) {
    %c0_i32 = arith.constant 0 : i32
    %c0_i32_0 = arith.constant 0 : i32
    %c0_i32_1 = arith.constant 0 : i32
    return %c0_i32, %c0_i32_0 : i32, i32
  }
  func.func @transform_16(%arg0: i32) -> (i32, i32) {
    %c0_i32 = arith.constant 0 : i32
    %c0_i32_0 = arith.constant 0 : i32
    %c0_i32_1 = arith.constant 0 : i32
    return %c0_i32, %c0_i32_0 : i32, i32
  }
  func.func @transform_17(%arg0: i32) -> (i32, i32, i32) {
    %c0_i32 = arith.constant 0 : i32
    %c0_i32_0 = arith.constant 0 : i32
    %c0_i32_1 = arith.constant 0 : i32
    return %arg0, %c0_i32, %c0_i32_0 : i32, i32, i32
  }
}

</mosaic_0001>

<bundles_post_ra>
// kernel: tpu_custom_call.1
= control target key start
LH: loop header
LB: loop body
LE: loop exit
PB: predicated region body
PF: predicated region fallthrough
CT: control target
= control target key end

     0   :  { %s5201_s0 = inlined_call_operand.hbm [shape: f32[2,8,32], index: 0, kind: input, shape index: {}, may-alias: {0,17}]   ;;  %s5202_s1 = inlined_call_operand.vmem [shape: f32[96,192], index: 1, kind: input, shape index: {}]   ;;  %s5203_s2 = inlined_call_operand.vmem [shape: f32[1,192], index: 2, kind: input, shape index: {}]   ;;  %s5204_s3 = inlined_call_operand.vmem [shape: f32[8,48], index: 3, kind: input, shape index: {}]   ;;  %s5205_s4 = inlined_call_operand.vmem [shape: f32[8,1], index: 4, kind: input, shape index: {}]   ;;  %s5206_s5 = inlined_call_operand.vmem [shape: f32[96,32], index: 5, kind: input, shape index: {}]   ;;  %s5207_s6 = inlined_call_operand.vmem [shape: f32[1,32], index: 6, kind: input, shape index: {}]   ;;  %s5208_s7 = inlined_call_operand.vmem [shape: f32[96,16], index: 7, kind: input, shape index: {}]   ;;  %s5209_s8 = inlined_call_operand.vmem [shape: f32[1,16], index: 8, kind: input, shape index: {}]   ;;  %s5210_s9 = inlined_call_operand.vmem [shape: f32[1,16], index: 9, kind: input, shape index: {}]   ;;  %s5211_s10 = inlined_call_operand.vmem [shape: f32[1,16], index: 10, kind: input, shape index: {}]   ;;  %s5212_s11 = inlined_call_operand.vmem [shape: f32[48,32], index: 11, kind: input, shape index: {}]   ;;  %s5213_s12 = inlined_call_operand.vmem [shape: f32[1,32], index: 12, kind: input, shape index: {}]   ;;  %s5214_s13 = inlined_call_operand.vmem [shape: f32[96,32], index: 13, kind: input, shape index: {}]   ;;  %s5215_s14 = inlined_call_operand.vmem [shape: f32[1,32], index: 14, kind: input, shape index: {}]   ;;  %s5216_s15 = inlined_call_operand.vmem [shape: f32[1,32], index: 15, kind: input, shape index: {}]   ;;  %s5217_s16 = inlined_call_operand.vmem [shape: f32[1,32], index: 16, kind: input, shape index: {}]   ;;  %s5218_s17 = inlined_call_operand.hbm [shape: f32[2,8,32], index: 17, kind: output, shape index: {}, may-alias: {0,17}]  }
   0x1   :  { %5220 = sst [smem:[#allocation8_spill]] %s5201_s0 }
   0x2   :  { %5221 = sst [smem:[#allocation9_spill]] %s5202_s1 }
   0x3   :  { %22 = vsyncpa [#allocation3], 0 }
   0x4   :  { %23 = vsyncpa [#allocation4], 0  ;;  %s4420_s24 = smov [#allocation2]  }
   0x5   :  { %s29_s25 = sshll.u32 %s4420_s24, 4  ;;  %s30_s25 = int_to_ptr.vmem [resolvable:$true] %s29_s25 }
   0x6   :  { %s4384_s26 = scalar_lea.vmem %s30_s25, 256  ;;  %p4389_p1 = scmp.lt.s32.totalorder %s30_s25, %s30_s25 }
   0x7   :  { %p4385_p0 = scmp.ne.s32.totalorder %s30_s25, %s4384_s26  ;;  %p4390_p2 = scmp.lt.s32.totalorder %s4384_s26, %s4384_s26 }
   0x9   :  { %p4391_p3 = por %p4390_p2, %p4389_p1 }
   0xb   :  { %p4392_p4 = pnand %p4391_p3, %p4385_p0 }
   0xd   :  { %4395 = shalt.err (!%p4392_p4)
}
   0xe   :  { %s4421_s27 = smov 128   ;;  %s4422_s28 = smov 8  }
   0xf   :  { %s5222_s30 = sld [smem:[#allocation8_spill]] }
  0x15   :  { %35 = dma.hbm_to_vmem [thread:$0]  %s5222_s30, 256, %s30_s25, [#allocation3], %s4421_s27, %s4421_s27, %s4422_s28  }
  0x16   :  { %4416 = dma.done.wait [#allocation3], 256  }
  0x17   :  { %4417 = vsyncadd [#allocation3], 4294967040  ;;  %v4423_v0 = vmov 0.0   ;;  %v4543_v1 = vld [vmem:[#allocation2] sm:$0xff]  ;;  %v4545_v2 = vld [vmem:[#allocation2 + $0x8] sm:$0xff]  ;;  %s5223_s1 = sld [smem:[#allocation9_spill]]  ;;  %v135_v39 = vlaneseq }
  0x18   :  { %216 = vmatprep.mubr.f32.mxu0 %v4423_v0  ;;  %3990 = vmatprep.subr.mxu1 %v4423_v0  ;;  %s4424_s20 = smov 32   ;;  %v107_v4 = vrot.slane %v4543_v1, 1  ;;  %v108_v5 = vrot.slane %v4545_v2, 1  ;;  %s4425_s30 = smov 64   ;;  %v100_v30 = vrot.slane %v4543_v1, 7  ;;  %vm128_vm0 = vcmask 261120  }
  0x19   :  { %114 = vrot.lane.b32.xlu0 %v4543_v1, %s4424_s20  ;;  %116 = vrot.lane.b32.xlu1 %v4545_v2, %s4424_s20  ;;  %v101_v32 = vrot.slane %v4545_v2, 7  ;;  %vm131_vm1 = vcmask 523264   ;;  %vm145_vm2 = vcmask 785408   ;;  %vm4426_vm3 = vmmov 0   ;;  %v97_v42 = vld [vmem:[%s5203_s2] sm:$0x3] }
  0x1a   :  { %3992 = vmatprep.mubr.msk.f32.mxu1 %vm4426_vm3, %v4423_v0  ;;  %v136_v40 = vshrl.u32 %v135_v39, 7  ;;  %vm229_vm4 = vcmask 64512   ;;  %s4427_s2 = smov 96   ;;  %s4428_s0 = smov 120   ;;  %vm2908_vm5 = vcmask 130048   ;;  %vm2911_vm6 = vcmask 195584  }
  0x1b   :  { %s4429_s18 = smov 56   ;;  %s4430_s19 = smov 88   ;;  %vm3001_vm7 = vcmask 252928   ;;  %vm2972_vm8 = vcmask 7168   ;;  %vm3013_vm9 = vcmask 392192  }
  0x1c   :  { %v141_v41 = vsub.s32 1, %v136_v40  ;;  %v137_v43 = vsub.s32 0, %v136_v40  ;;  %s4431_s21 = smov 24   ;;  %s4432_s22 = smov 112  }
  0x1d   :  { %v96_v3 = vld [vmem:[%s5223_s1 + $0xb8] sm:$0xff]  ;;  %v95_v6 = vld [vmem:[%s5223_s1 + $0xb0] sm:$0xff]  ;;  %v94_v7 = vld [vmem:[%s5223_s1 + $0xa8] sm:$0xff]  ;;  %122 = vrot.lane.b32.xlu0 %v107_v4, %s4425_s30  ;;  %s4433_s23 = smov 48   ;;  %s4434_s24 = smov 80  }
  0x1e   :  { %160 = vmatprep.subr.mxu0 %v96_v3  ;;  %v93_v8 = vld [vmem:[%s5223_s1 + $0xa0] sm:$0xff]  ;;  %v92_v9 = vld [vmem:[%s5223_s1 + $0x98] sm:$0xff]  ;;  %124 = vrot.lane.b32.xlu1 %v108_v5, %s4425_s30  ;;  %v91_v10 = vld [vmem:[%s5223_s1 + $0x90] sm:$0xff]  ;;  %v142_v44 = vrot.slane %v97_v42, %v141_v41  ;;  %v138_v46 = vrot.slane %v97_v42, %v137_v43  ;;  %s4435_s25 = smov 16   ;;  %s4436_s26 = smov 104  }
  0x1f   :  { %161 = vmatpush1.msra.mxu0 %v95_v6  ;;  %v90_v11 = vld [vmem:[%s5223_s1 + $0x88] sm:$0xff]  ;;  %v89_v12 = vld [vmem:[%s5223_s1 + $0x80] sm:$0xff]  ;;  %v88_v13 = vld [vmem:[%s5223_s1 + $0x78] sm:$0xff]  ;;  %s4438_s29 = smov 72  }
  0x20   :  { %162 = vmatprep.subr.mxu0 %v94_v7  ;;  %v87_v14 = vld [vmem:[%s5223_s1 + $0x70] sm:$0xff]  ;;  %v86_v15 = vld [vmem:[%s5223_s1 + $0x68] sm:$0xff]  ;;  %v85_v16 = vld [vmem:[%s5223_s1 + $0x60] sm:$0xff] }
  0x21   :  { %163 = vmatpush1.msra.mxu0 %v93_v8  ;;  %v84_v17 = vld [vmem:[%s5223_s1 + $0x58] sm:$0xff]  ;;  %v83_v18 = vld [vmem:[%s5223_s1 + $0x50] sm:$0xff]  ;;  %v82_v19 = vld [vmem:[%s5223_s1 + $0x48] sm:$0xff] }
  0x22   :  { %164 = vmatprep.subr.mxu0 %v92_v9  ;;  %v81_v20 = vld [vmem:[%s5223_s1 + $0x40] sm:$0xff]  ;;  %v80_v21 = vld [vmem:[%s5223_s1 + $0x38] sm:$0xff]  ;;  %v79_v22 = vld [vmem:[%s5223_s1 + $0x30] sm:$0xff] }
  0x23   :  { %165 = vmatpush1.msra.mxu0 %v91_v10  ;;  %v78_v23 = vld [vmem:[%s5223_s1 + $0x28] sm:$0xff]  ;;  %v77_v24 = vld [vmem:[%s5223_s1 + $0x20] sm:$0xff]  ;;  %v76_v25 = vld [vmem:[%s5223_s1 + $0x18] sm:$0xff] }
  0x24   :  { %166 = vmatprep.subr.mxu0 %v90_v11  ;;  %v75_v26 = vld [vmem:[%s5223_s1 + $0x10] sm:$0xff]  ;;  %v74_v27 = vld [vmem:[%s5223_s1 + $0x8] sm:$0xff]  ;;  %v73_v28 = vld [vmem:[%s5223_s1] sm:$0xff]  ;;  %s4437_s1 = smov 40  }
  0x25   :  { %167 = vmatpush1.msra.mxu0 %v89_v12 }
  0x26   :  { %168 = vmatprep.subr.mxu0 %v88_v13 }
  0x27   :  { %169 = vmatpush1.msra.mxu0 %v87_v14 }
  0x28   :  { %170 = vmatprep.subr.mxu0 %v86_v15 }
  0x29   :  { %171 = vmatpush1.msra.mxu0 %v85_v16 }
  0x2a   :  { %172 = vmatprep.subr.mxu0 %v84_v17 }
  0x2b   :  { %173 = vmatpush1.msra.mxu0 %v83_v18 }
  0x2c   :  { %174 = vmatprep.subr.mxu0 %v82_v19 }
  0x2d   :  { %175 = vmatpush1.msra.mxu0 %v81_v20 }
  0x2e   :  { %176 = vmatprep.subr.mxu0 %v80_v21 }
  0x2f   :  { %177 = vmatpush1.msra.mxu0 %v79_v22 }
  0x30   :  { %178 = vmatprep.subr.mxu0 %v78_v23 }
  0x31   :  { %179 = vmatpush1.msra.mxu0 %v77_v24 }
  0x32   :  { %180 = vmatprep.subr.mxu0 %v76_v25 }
  0x33   :  { %181 = vmatpush1.msra.mxu0 %v75_v26 }
  0x34   :  { %182 = vmatprep.subr.mxu0 %v74_v27 }
  0x35   :  { %183 = vmatpush1.msra.mxu0 %v73_v28 }
  0x36   :  { %4045 = vmatprep.subr.mxu0 %v4423_v0 }
  0x8b   :  { %v115_v29 = vpop.permute.xlu0 %114  ;;  %v117_v31 = vpop.permute.xlu1 %116 }
  0x8c   :  { %v129_v33 = vsel %vm128_vm0, %v100_v30, %v115_v29  ;;  %v130_v36 = vsel %vm128_vm0, %v101_v32, %v117_v31 }
  0x8f   :  { %v123_v34 = vpop.permute.xlu0 %122 }
  0x90   :  { %v132_v35 = vsel %vm131_vm1, %v129_v33, %v123_v34  ;;  %v125_v37 = vpop.permute.xlu1 %124 }
  0x91   :  { %3794 = vmatmul.mubr.msk.f32.vlgmr.msra.gmra.mxu0 %vm145_vm2, %v132_v35  ;;  %v133_v38 = vsel %vm131_vm1, %v130_v36, %v125_v37 }
  0x92   :  { %222 = vmatprep.mubr.f32.mxu0 %v4423_v0 }
  0x95   :  { %3795 = vmatmul.mubr.msk.f32.gmra.mxu0 %vm145_vm2, %v133_v38 }
  0x96   :  { %4047 = vmatprep.mubr.msk.f32.mxu0 %vm4426_vm3, %v4423_v0 }
 0x151   :  { %v218_v45 = vpop.f32.mrf.mxu0 }
 0x152   :  { %v4648_v50 = vadd.f32 %v218_v45, %v138_v46 }
 0x153   :  { %v220_v47 = vpop.f32.mrf.mxu0 }
 0x154   :  { %v4644_v48 = vadd.f32 %v220_v47, %v142_v44 }
 0x155   :  { %v224_v49 = vpop.f32.mrf.mxu0 }
 0x156   :  { %3991 = vmatpush3.xpose.msk.msra.mxu1 %vm229_vm4, %v4644_v48  ;;  %v4659_v53 = vadd.f32 %v224_v49, %v138_v46 }
 0x157   :  { %v226_v51 = vpop.f32.mrf.mxu0  ;;  %3995 = vmatprep.subr.mxu1 %v4423_v0 }
 0x158   :  { %v4651_v52 = vadd.f32 %v226_v51, %v142_v44 }
 0x159   :  { %3993 = vmatmul.mubr.msk.f32.vlgmr.msra.gmra.mxu1 %vm229_vm4, %v4648_v50 }
 0x15a   :  { %3996 = vmatpush3.xpose.msk.msra.mxu1 %vm229_vm4, %v4651_v52  ;;  %3997 = vmatprep.mubr.msk.f32.mxu1 %vm4426_vm3, %v4423_v0 }
 0x15b   :  { %4000 = vmatprep.subr.mxu1 %v4423_v0 }
 0x15d   :  { %3998 = vmatmul.mubr.msk.f32.vlgmr.msra.gmra.mxu1 %vm229_vm4, %v4659_v53 }
 0x15e   :  { %4002 = vmatprep.mubr.msk.f32.mxu1 %vm4426_vm3, %v4423_v0 }
 0x219   :  { %v302_v54 = vpop.f32.mrf.mxu1 }
 0x21a   :  { %v382_v55 = vmul.f32 0.5, %v302_v54 }
 0x21b   :  { %v3994_v56 = vpop.f32.mrf.mxu1 }
 0x21c   :  { %v384_v57 = vsel %vm229_vm4, %v382_v55, -inf }
 0x21d   :  { %385 = vmax.xlane.f32.xlu0 %v384_v57  ;;  %v378_v58 = vpop.f32.mrf.mxu1 }
 0x21e   :  { %v383_v59 = vmul.f32 0.5, %v378_v58 }
 0x21f   :  { %v3999_v60 = vpop.f32.mrf.mxu1 }
 0x220   :  { %v387_v61 = vsel %vm229_vm4, %v383_v59, -inf }
 0x221   :  { %388 = vmax.xlane.f32.xlu1 %v387_v61 }
 0x232   :  { %406 = vrot.lane.b32.xlu1 %v4648_v50, %s4425_s30 }
 0x236   :  { %560 = vrot.lane.b32.xlu1 %v4648_v50, %s4427_s2 }
 0x23a   :  { %558 = vrot.lane.b32.xlu1 %v4648_v50, %s4424_s20 }
 0x23e   :  { %636 = vrot.lane.b32.xlu1 %v4659_v53, %s4424_s20 }
 0x2a6   :  { %v386_v62 = vpop.xlane.xlu0 %385 }
 0x2a7   :  { %v390_v63 = vsub.f32 %v382_v55, %v386_v62 }
 0x2a9   :  { %v392_v1 = vmul.f32 1.442695, %v390_v63 }
 0x2aa   :  { %v389_v2 = vpop.xlane.xlu1 %388 }
 0x2ab   :  { %4302 = vpow2.f32 %v392_v1  ;;  %v391_v3 = vsub.f32 %v383_v59, %v389_v2 }
 0x2ad   :  { %v394_v4 = vmul.f32 1.442695, %v391_v3 }
 0x2ae   :  { %v407_v5 = vpop.permute.xlu1 %406 }
 0x2af   :  { %4304 = vpow2.f32 %v394_v4  ;;  %4001 = vmatpush3.msra.mxu1 %v407_v5 }
 0x2b0   :  { %4005 = vmatprep.subr.mxu1 %v4423_v0 }
 0x2b2   :  { %v561_v14 = vpop.permute.xlu1 %560 }
 0x2b6   :  { %v559_v18 = vpop.permute.xlu1 %558 }
 0x2b8   :  { %v4303_v6 = vpop.eup %4302 }
 0x2b9   :  { %v396_v7 = vsel %vm229_vm4, %v4303_v6, 0.0 }
 0x2ba   :  { %397 = vadd.xlane.f32.xlu0 %v396_v7  ;;  %v637_v20 = vpop.permute.xlu1 %636 }
 0x2bc   :  { %v4305_v8 = vpop.eup %4304 }
 0x2bd   :  { %v399_v9 = vsel %vm229_vm4, %v4305_v8, 0.0 }
 0x2be   :  { %400 = vadd.xlane.f32.xlu0 %v399_v9 }
 0x2d4   :  { %482 = vrot.lane.b32.xlu0 %v4659_v53, %s4425_s30 }
 0x2d8   :  { %638 = vrot.lane.b32.xlu0 %v4659_v53, %s4427_s2 }
 0x343   :  { %v398_v10 = vpop.xlane.xlu0 %397 }
 0x344   :  { %4306 = vrcp.f32 %v398_v10 }
 0x347   :  { %v401_v11 = vpop.xlane.xlu0 %400 }
 0x348   :  { %4308 = vrcp.f32 %v401_v11 }
 0x34b   :  { %v483_v15 = vpop.permute.xlu0 %482 }
 0x34f   :  { %v639_v19 = vpop.permute.xlu0 %638 }
 0x351   :  { %v4307_v12 = vpop.eup %4306 }
 0x352   :  { %v404_v13 = vmul.f32 %v4307_v12, %v4303_v6 }
 0x354   :  { %4003 = vmatmul.mubr.msk.f32.vlgmr.msra.gmra.mxu1 %vm229_vm4, %v404_v13 }
 0x355   :  { %v4309_v16 = vpop.eup %4308  ;;  %4006 = vmatpush3.msra.mxu1 %v483_v15  ;;  %4007 = vmatprep.mubr.msk.f32.mxu1 %vm4426_vm3, %v4423_v0 }
 0x356   :  { %4010 = vmatprep.subr.mxu1 %v4423_v0  ;;  %v405_v17 = vmul.f32 %v4309_v16, %v4305_v8 }
 0x358   :  { %4008 = vmatmul.mubr.msk.f32.vlgmr.msra.gmra.mxu1 %vm229_vm4, %v405_v17 }
 0x359   :  { %4011 = vmatpush3.xpose.msk.msra.mxu1 %vm229_vm4, %v561_v14  ;;  %4012 = vmatprep.mubr.msk.f32.mxu1 %vm4426_vm3, %v4423_v0 }
 0x35a   :  { %4015 = vmatprep.subr.mxu1 %v4423_v0 }
 0x35c   :  { %4013 = vmatmul.mubr.msk.f32.vlgmr.msra.gmra.mxu1 %vm229_vm4, %v559_v18 }
 0x35d   :  { %4016 = vmatpush3.xpose.msk.msra.mxu1 %vm229_vm4, %v639_v19  ;;  %4017 = vmatprep.mubr.msk.f32.mxu1 %vm4426_vm3, %v4423_v0 }
 0x35e   :  { %4020 = vmatprep.subr.mxu1 %v4423_v0 }
 0x360   :  { %4018 = vmatmul.mubr.msk.f32.vlgmr.msra.gmra.mxu1 %vm229_vm4, %v637_v20 }
 0x361   :  { %4022 = vmatprep.mubr.msk.f32.mxu1 %vm4426_vm3, %v4423_v0 }
 0x414   :  { %v4700_v21 = vpop.f32.mrf.mxu1 }
 0x416   :  { %v4004_v22 = vpop.f32.mrf.mxu1 }
 0x418   :  { %v4702_v23 = vpop.f32.mrf.mxu1 }
 0x41a   :  { %v4009_v24 = vpop.f32.mrf.mxu1 }
 0x41c   :  { %v632_v25 = vpop.f32.mrf.mxu1 }
 0x41d   :  { %v714_v26 = vmul.f32 0.5, %v632_v25 }
 0x41e   :  { %v4014_v27 = vpop.f32.mrf.mxu1 }
 0x41f   :  { %v716_v28 = vsel %vm229_vm4, %v714_v26, -inf }
 0x420   :  { %717 = vmax.xlane.f32.xlu0 %v716_v28  ;;  %v710_v29 = vpop.f32.mrf.mxu1 }
 0x421   :  { %v715_v30 = vmul.f32 0.5, %v710_v29 }
 0x422   :  { %v4019_v31 = vpop.f32.mrf.mxu1 }
 0x423   :  { %v719_v32 = vsel %vm229_vm4, %v715_v30, -inf }
 0x424   :  { %720 = vmax.xlane.f32.xlu1 %v719_v32 }
 0x435   :  { %738 = vrot.lane.b32.xlu1 %v4644_v48, %s4427_s2 }
 0x439   :  { %892 = vrot.lane.b32.xlu1 %v4644_v48, %s4428_s0 }
 0x43d   :  { %890 = vrot.lane.b32.xlu1 %v4648_v50, %s4428_s0 }
 0x441   :  { %968 = vrot.lane.b32.xlu1 %v4659_v53, %s4428_s0 }
 0x4a9   :  { %v718_v33 = vpop.xlane.xlu0 %717 }
 0x4aa   :  { %v722_v34 = vsub.f32 %v714_v26, %v718_v33 }
 0x4ac   :  { %v724_v35 = vmul.f32 1.442695, %v722_v34 }
 0x4ad   :  { %v721_v36 = vpop.xlane.xlu1 %720 }
 0x4ae   :  { %4310 = vpow2.f32 %v724_v35  ;;  %v723_v37 = vsub.f32 %v715_v30, %v721_v36 }
 0x4b0   :  { %v726_v38 = vmul.f32 1.442695, %v723_v37 }
 0x4b1   :  { %v739_v39 = vpop.permute.xlu1 %738 }
 0x4b2   :  { %4312 = vpow2.f32 %v726_v38  ;;  %4021 = vmatpush3.msra.mxu1 %v739_v39 }
 0x4b3   :  { %4025 = vmatprep.subr.mxu1 %v4423_v0 }
 0x4b5   :  { %v893_v49 = vpop.permute.xlu1 %892 }
 0x4b9   :  { %v891_v56 = vpop.permute.xlu1 %890 }
 0x4bb   :  { %v4311_v40 = vpop.eup %4310 }
 0x4bc   :  { %v728_v41 = vsel %vm229_vm4, %v4311_v40, 0.0 }
 0x4bd   :  { %729 = vadd.xlane.f32.xlu0 %v728_v41  ;;  %v969_v58 = vpop.permute.xlu1 %968 }
 0x4bf   :  { %v4313_v42 = vpop.eup %4312 }
 0x4c0   :  { %v731_v43 = vsel %vm229_vm4, %v4313_v42, 0.0 }
 0x4c1   :  { %732 = vadd.xlane.f32.xlu0 %v731_v43 }
 0x4d7   :  { %814 = vrot.lane.b32.xlu0 %v4651_v52, %s4427_s2  ;;  %s4439_s2 = smov 127  }
 0x4db   :  { %970 = vrot.lane.b32.xlu0 %v4651_v52, %s4428_s0  ;;  %s4440_s0 = smov 31  }
 0x546   :  { %v730_v44 = vpop.xlane.xlu0 %729 }
 0x547   :  { %4314 = vrcp.f32 %v730_v44 }
 0x54a   :  { %v733_v45 = vpop.xlane.xlu0 %732 }
 0x54b   :  { %4316 = vrcp.f32 %v733_v45 }
 0x54e   :  { %v815_v51 = vpop.permute.xlu0 %814 }
 0x552   :  { %v971_v57 = vpop.permute.xlu0 %970 }
 0x554   :  { %v4315_v46 = vpop.eup %4314 }
 0x555   :  { %v736_v47 = vmul.f32 %v4315_v46, %v4311_v40 }
 0x557   :  { %4023 = vmatmul.mubr.msk.f32.vlgmr.msra.gmra.mxu1 %vm229_vm4, %v736_v47 }
 0x558   :  { %v4317_v54 = vpop.eup %4316  ;;  %4026 = vmatpush3.msra.mxu1 %v815_v51  ;;  %4027 = vmatprep.mubr.msk.f32.mxu1 %vm4426_vm3, %v4423_v0 }
 0x559   :  { %4030 = vmatprep.subr.mxu1 %v4423_v0  ;;  %v737_v55 = vmul.f32 %v4317_v54, %v4313_v42 }
 0x55b   :  { %4028 = vmatmul.mubr.msk.f32.vlgmr.msra.gmra.mxu1 %vm229_vm4, %v737_v55 }
 0x55c   :  { %4031 = vmatpush3.xpose.msk.msra.mxu1 %vm229_vm4, %v893_v49  ;;  %4032 = vmatprep.mubr.msk.f32.mxu1 %vm4426_vm3, %v4423_v0 }
 0x55d   :  { %4035 = vmatprep.subr.mxu1 %v4423_v0 }
 0x55f   :  { %4033 = vmatmul.mubr.msk.f32.vlgmr.msra.gmra.mxu1 %vm229_vm4, %v891_v56 }
 0x560   :  { %4036 = vmatpush3.xpose.msk.msra.mxu1 %vm229_vm4, %v971_v57  ;;  %4037 = vmatprep.mubr.msk.f32.mxu1 %vm4426_vm3, %v4423_v0 }
 0x561   :  { %4040 = vmatprep.subr.mxu1 %v4423_v0 }
 0x563   :  { %4038 = vmatmul.mubr.msk.f32.vlgmr.msra.gmra.mxu1 %vm229_vm4, %v969_v58 }
 0x564   :  { %4042 = vmatprep.mubr.msk.f32.mxu1 %vm4426_vm3, %v4423_v0 }
 0x617   :  { %v4734_v59 = vpop.f32.mrf.mxu1 }
 0x619   :  { %v4024_v60 = vpop.f32.mrf.mxu1 }
 0x61b   :  { %v4736_v61 = vpop.f32.mrf.mxu1 }
 0x61d   :  { %v4029_v62 = vpop.f32.mrf.mxu1 }
 0x61f   :  { %v964_v63 = vpop.f32.mrf.mxu1 }
 0x620   :  { %v1046_v1 = vmul.f32 0.5, %v964_v63 }
 0x621   :  { %v4034_v2 = vpop.f32.mrf.mxu1 }
 0x622   :  { %v1048_v3 = vsel %vm229_vm4, %v1046_v1, -inf }
 0x623   :  { %1049 = vmax.xlane.f32.xlu0 %v1048_v3  ;;  %v1042_v4 = vpop.f32.mrf.mxu1 }
 0x624   :  { %v1047_v5 = vmul.f32 0.5, %v1042_v4 }
 0x625   :  { %v4039_v6 = vpop.f32.mrf.mxu1 }
 0x626   :  { %v1051_v7 = vsel %vm229_vm4, %v1047_v5, -inf }
 0x627   :  { %1052 = vmax.xlane.f32.xlu1 %v1051_v7 }
 0x638   :  { %1070 = vrot.lane.b32.xlu1 %v4648_v50, %s4429_s18 }
 0x639   :  { %1146 = vrot.lane.b32.xlu0 %v4659_v53, %s4429_s18  ;;  %s4441_s18 = smov 1  }
 0x63c   :  { %1224 = vrot.lane.b32.xlu1 %v4648_v50, %s4430_s19 }
 0x640   :  { %1302 = vrot.lane.b32.xlu1 %v4659_v53, %s4430_s19 }
 0x644   :  { %1300 = vrot.lane.b32.xlu1 %v4659_v53, %s4431_s21 }
 0x6ac   :  { %v1050_v8 = vpop.xlane.xlu0 %1049 }
 0x6ad   :  { %v1054_v9 = vsub.f32 %v1046_v1, %v1050_v8 }
 0x6af   :  { %v1056_v10 = vmul.f32 1.442695, %v1054_v9 }
 0x6b0   :  { %v1147_v11 = vpop.permute.xlu0 %1146  ;;  %v1053_v12 = vpop.xlane.xlu1 %1052 }
 0x6b1   :  { %4318 = vpow2.f32 %v1056_v10  ;;  %v1055_v13 = vsub.f32 %v1047_v5, %v1053_v12  ;;  %4046 = vmatpush3.msra.mxu0 %v1147_v11 }
 0x6b2   :  { %4055 = vmatprep.subr.mxu0 %v4423_v0 }
 0x6b3   :  { %v1058_v14 = vmul.f32 1.442695, %v1055_v13 }
 0x6b4   :  { %v1071_v15 = vpop.permute.xlu1 %1070 }
 0x6b5   :  { %4320 = vpow2.f32 %v1058_v14  ;;  %4041 = vmatpush3.msra.mxu1 %v1071_v15 }
 0x6b6   :  { %4050 = vmatprep.subr.mxu1 %v4423_v0 }
 0x6b8   :  { %v1225_v24 = vpop.permute.xlu1 %1224 }
 0x6bc   :  { %v1303_v28 = vpop.permute.xlu1 %1302 }
 0x6be   :  { %v4319_v16 = vpop.eup %4318 }
 0x6bf   :  { %v1060_v17 = vsel %vm229_vm4, %v4319_v16, 0.0 }
 0x6c0   :  { %1061 = vadd.xlane.f32.xlu0 %v1060_v17  ;;  %v1301_v31 = vpop.permute.xlu1 %1300 }
 0x6c2   :  { %v4321_v18 = vpop.eup %4320 }
 0x6c3   :  { %v1063_v19 = vsel %vm229_vm4, %v4321_v18, 0.0 }
 0x6c4   :  { %1064 = vadd.xlane.f32.xlu0 %v1063_v19 }
 0x6da   :  { %1222 = vrot.lane.b32.xlu0 %v4648_v50, %s4431_s21 }
 0x749   :  { %v1062_v20 = vpop.xlane.xlu0 %1061 }
 0x74a   :  { %4322 = vrcp.f32 %v1062_v20 }
 0x74d   :  { %v1065_v22 = vpop.xlane.xlu0 %1064 }
 0x74e   :  { %4324 = vrcp.f32 %v1065_v22 }
 0x751   :  { %v1223_v30 = vpop.permute.xlu0 %1222 }
 0x757   :  { %v4323_v25 = vpop.eup %4322 }
 0x758   :  { %v1068_v26 = vmul.f32 %v4323_v25, %v4319_v16 }
 0x75a   :  { %4043 = vmatmul.mubr.msk.f32.vlgmr.msra.gmra.mxu1 %vm229_vm4, %v1068_v26 }
 0x75b   :  { %v4325_v27 = vpop.eup %4324  ;;  %4051 = vmatpush3.xpose.msk.msra.mxu1 %vm229_vm4, %v1225_v24  ;;  %4052 = vmatprep.mubr.msk.f32.mxu1 %vm4426_vm3, %v4423_v0 }
 0x75c   :  { %v1069_v29 = vmul.f32 %v4325_v27, %v4321_v18  ;;  %4060 = vmatprep.subr.mxu1 %v4423_v0 }
 0x75e   :  { %4048 = vmatmul.mubr.msk.f32.vlgmr.msra.gmra.mxu0 %vm229_vm4, %v1069_v29  ;;  %4053 = vmatmul.mubr.msk.f32.vlgmr.msra.gmra.mxu1 %vm229_vm4, %v1223_v30 }
 0x75f   :  { %4056 = vmatpush3.xpose.msk.msra.mxu0 %vm229_vm4, %v1303_v28  ;;  %4057 = vmatprep.mubr.msk.f32.mxu0 %vm4426_vm3, %v4423_v0 }
 0x760   :  { %4065 = vmatprep.subr.mxu0 %v4423_v0  ;;  %4062 = vmatprep.mubr.msk.f32.mxu1 %vm4426_vm3, %v4423_v0 }
 0x762   :  { %4058 = vmatmul.mubr.msk.f32.vlgmr.msra.gmra.mxu0 %vm229_vm4, %v1301_v31 }
 0x763   :  { %4067 = vmatprep.mubr.msk.f32.mxu0 %vm4426_vm3, %v4423_v0 }
 0x81a   :  { %v4770_v32 = vpop.f32.mrf.mxu1 }
 0x81c   :  { %v4044_v33 = vpop.f32.mrf.mxu1 }
 0x81e   :  { %v4772_v34 = vpop.f32.mrf.mxu0  ;;  %v1296_v35 = vpop.f32.mrf.mxu1 }
 0x81f   :  { %v1378_v36 = vmul.f32 0.5, %v1296_v35 }
 0x820   :  { %v4049_v37 = vpop.f32.mrf.mxu0  ;;  %v4054_v38 = vpop.f32.mrf.mxu1 }
 0x821   :  { %v1380_v39 = vsel %vm229_vm4, %v1378_v36, -inf }
 0x822   :  { %v1374_v40 = vpop.f32.mrf.mxu0  ;;  %1381 = vmax.xlane.f32.xlu0 %v1380_v39 }
 0x823   :  { %v1379_v41 = vmul.f32 0.5, %v1374_v40 }
 0x824   :  { %v4059_v42 = vpop.f32.mrf.mxu0 }
 0x825   :  { %v1383_v43 = vsel %vm229_vm4, %v1379_v41, -inf }
 0x826   :  { %1384 = vmax.xlane.f32.xlu1 %v1383_v43 }
 0x837   :  { %1402 = vrot.lane.b32.xlu1 %v4644_v48, %s4430_s19 }
 0x838   :  { %1478 = vrot.lane.b32.xlu0 %v4651_v52, %s4430_s19  ;;  %s4442_s19 = smov 97  }
 0x83b   :  { %1556 = vrot.lane.b32.xlu1 %v4644_v48, %s4432_s22 }
 0x83f   :  { %1634 = vrot.lane.b32.xlu1 %v4651_v52, %s4432_s22 }
 0x843   :  { %1632 = vrot.lane.b32.xlu1 %v4659_v53, %s4432_s22 }
 0x8ab   :  { %v1382_v44 = vpop.xlane.xlu0 %1381 }
 0x8ac   :  { %v1386_v45 = vsub.f32 %v1378_v36, %v1382_v44 }
 0x8ae   :  { %v1388_v46 = vmul.f32 1.442695, %v1386_v45 }
 0x8af   :  { %v1385_v47 = vpop.xlane.xlu1 %1384  ;;  %v1479_v49 = vpop.permute.xlu0 %1478 }
 0x8b0   :  { %4326 = vpow2.f32 %v1388_v46  ;;  %v1387_v51 = vsub.f32 %v1379_v41, %v1385_v47  ;;  %4066 = vmatpush3.msra.mxu0 %v1479_v49 }
 0x8b1   :  { %4075 = vmatprep.subr.mxu0 %v4423_v0 }
 0x8b2   :  { %v1390_v54 = vmul.f32 1.442695, %v1387_v51 }
 0x8b3   :  { %v1403_v55 = vpop.permute.xlu1 %1402 }
 0x8b4   :  { %4328 = vpow2.f32 %v1390_v54  ;;  %4061 = vmatpush3.msra.mxu1 %v1403_v55 }
 0x8b5   :  { %4070 = vmatprep.subr.mxu1 %v4423_v0 }
 0x8b7   :  { %v1557_v1 = vpop.permute.xlu1 %1556 }
 0x8bb   :  { %v1635_v5 = vpop.permute.xlu1 %1634 }
 0x8bd   :  { %v4327_v56 = vpop.eup %4326 }
 0x8be   :  { %v1392_v57 = vsel %vm229_vm4, %v4327_v56, 0.0 }
 0x8bf   :  { %1393 = vadd.xlane.f32.xlu0 %v1392_v57  ;;  %v1633_v8 = vpop.permute.xlu1 %1632 }
 0x8c1   :  { %v4329_v58 = vpop.eup %4328 }
 0x8c2   :  { %v1395_v60 = vsel %vm229_vm4, %v4329_v58, 0.0 }
 0x8c3   :  { %1396 = vadd.xlane.f32.xlu0 %v1395_v60 }
 0x8d9   :  { %1554 = vrot.lane.b32.xlu0 %v4648_v50, %s4432_s22 }
 0x948   :  { %v1394_v62 = vpop.xlane.xlu0 %1393 }
 0x949   :  { %4330 = vrcp.f32 %v1394_v62 }
 0x94c   :  { %v1397_v63 = vpop.xlane.xlu0 %1396 }
 0x94d   :  { %4332 = vrcp.f32 %v1397_v63 }
 0x950   :  { %v1555_v7 = vpop.permute.xlu0 %1554 }
 0x956   :  { %v4331_v2 = vpop.eup %4330 }
 0x957   :  { %v1400_v3 = vmul.f32 %v4331_v2, %v4327_v56 }
 0x959   :  { %4063 = vmatmul.mubr.msk.f32.vlgmr.msra.gmra.mxu1 %vm229_vm4, %v1400_v3 }
 0x95a   :  { %v4333_v4 = vpop.eup %4332  ;;  %4071 = vmatpush3.xpose.msk.msra.mxu1 %vm229_vm4, %v1557_v1  ;;  %4072 = vmatprep.mubr.msk.f32.mxu1 %vm4426_vm3, %v4423_v0 }
 0x95b   :  { %v1401_v6 = vmul.f32 %v4333_v4, %v4329_v58  ;;  %4080 = vmatprep.subr.mxu1 %v4423_v0 }
 0x95d   :  { %4068 = vmatmul.mubr.msk.f32.vlgmr.msra.gmra.mxu0 %vm229_vm4, %v1401_v6  ;;  %4073 = vmatmul.mubr.msk.f32.vlgmr.msra.gmra.mxu1 %vm229_vm4, %v1555_v7 }
 0x95e   :  { %4076 = vmatpush3.xpose.msk.msra.mxu0 %vm229_vm4, %v1635_v5  ;;  %4077 = vmatprep.mubr.msk.f32.mxu0 %vm4426_vm3, %v4423_v0 }
 0x95f   :  { %4085 = vmatprep.subr.mxu0 %v4423_v0  ;;  %4082 = vmatprep.mubr.msk.f32.mxu1 %vm4426_vm3, %v4423_v0 }
 0x961   :  { %4078 = vmatmul.mubr.msk.f32.vlgmr.msra.gmra.mxu0 %vm229_vm4, %v1633_v8 }
 0x962   :  { %4087 = vmatprep.mubr.msk.f32.mxu0 %vm4426_vm3, %v4423_v0 }
 0xa19   :  { %v4804_v9 = vpop.f32.mrf.mxu1 }
 0xa1b   :  { %v4064_v10 = vpop.f32.mrf.mxu1 }
 0xa1d   :  { %v4806_v11 = vpop.f32.mrf.mxu0  ;;  %v1628_v12 = vpop.f32.mrf.mxu1 }
 0xa1e   :  { %v1710_v13 = vmul.f32 0.5, %v1628_v12 }
 0xa1f   :  { %v4069_v14 = vpop.f32.mrf.mxu0  ;;  %v4074_v15 = vpop.f32.mrf.mxu1 }
 0xa20   :  { %v1712_v16 = vsel %vm229_vm4, %v1710_v13, -inf }
 0xa21   :  { %v1706_v17 = vpop.f32.mrf.mxu0  ;;  %1713 = vmax.xlane.f32.xlu0 %v1712_v16 }
 0xa22   :  { %v1711_v18 = vmul.f32 0.5, %v1706_v17 }
 0xa23   :  { %v4079_v19 = vpop.f32.mrf.mxu0 }
 0xa24   :  { %v1715_v20 = vsel %vm229_vm4, %v1711_v18, -inf }
 0xa25   :  { %1716 = vmax.xlane.f32.xlu1 %v1715_v20 }
 0xa36   :  { %1734 = vrot.lane.b32.xlu1 %v4648_v50, %s4433_s23 }
 0xa37   :  { %1810 = vrot.lane.b32.xlu0 %v4659_v53, %s4433_s23 }
 0xa3a   :  { %1888 = vrot.lane.b32.xlu1 %v4648_v50, %s4434_s24 }
 0xa3e   :  { %1966 = vrot.lane.b32.xlu1 %v4659_v53, %s4434_s24 }
 0xa42   :  { %1964 = vrot.lane.b32.xlu1 %v4659_v53, %s4435_s25 }
 0xaaa   :  { %v1714_v22 = vpop.xlane.xlu0 %1713 }
 0xaab   :  { %v1718_v24 = vsub.f32 %v1710_v13, %v1714_v22 }
 0xaad   :  { %v1720_v25 = vmul.f32 1.442695, %v1718_v24 }
 0xaae   :  { %v1717_v26 = vpop.xlane.xlu1 %1716  ;;  %v1811_v27 = vpop.permute.xlu0 %1810 }
 0xaaf   :  { %4334 = vpow2.f32 %v1720_v25  ;;  %v1719_v28 = vsub.f32 %v1711_v18, %v1717_v26  ;;  %4086 = vmatpush3.msra.mxu0 %v1811_v27 }
 0xab0   :  { %4095 = vmatprep.subr.mxu0 %v4423_v0 }
 0xab1   :  { %v1722_v29 = vmul.f32 1.442695, %v1719_v28 }
 0xab2   :  { %v1735_v30 = vpop.permute.xlu1 %1734 }
 0xab3   :  { %4336 = vpow2.f32 %v1722_v29  ;;  %4081 = vmatpush3.msra.mxu1 %v1735_v30 }
 0xab4   :  { %4090 = vmatprep.subr.mxu1 %v4423_v0 }
 0xab6   :  { %v1889_v39 = vpop.permute.xlu1 %1888 }
 0xaba   :  { %v1967_v43 = vpop.permute.xlu1 %1966 }
 0xabc   :  { %v4335_v31 = vpop.eup %4334 }
 0xabd   :  { %v1724_v33 = vsel %vm229_vm4, %v4335_v31, 0.0 }
 0xabe   :  { %1725 = vadd.xlane.f32.xlu0 %v1724_v33  ;;  %v1965_v46 = vpop.permute.xlu1 %1964 }
 0xac0   :  { %v4337_v35 = vpop.eup %4336 }
 0xac1   :  { %v1727_v36 = vsel %vm229_vm4, %v4337_v35, 0.0 }
 0xac2   :  { %1728 = vadd.xlane.f32.xlu0 %v1727_v36 }
 0xad8   :  { %1886 = vrot.lane.b32.xlu0 %v4648_v50, %s4435_s25 }
 0xb47   :  { %v1726_v37 = vpop.xlane.xlu0 %1725 }
 0xb48   :  { %4338 = vrcp.f32 %v1726_v37 }
 0xb4b   :  { %v1729_v38 = vpop.xlane.xlu0 %1728 }
 0xb4c   :  { %4340 = vrcp.f32 %v1729_v38 }
 0xb4f   :  { %v1887_v45 = vpop.permute.xlu0 %1886 }
 0xb55   :  { %v4339_v40 = vpop.eup %4338 }
 0xb56   :  { %v1732_v41 = vmul.f32 %v4339_v40, %v4335_v31 }
 0xb58   :  { %4083 = vmatmul.mubr.msk.f32.vlgmr.msra.gmra.mxu1 %vm229_vm4, %v1732_v41 }
 0xb59   :  { %v4341_v42 = vpop.eup %4340  ;;  %4091 = vmatpush3.xpose.msk.msra.mxu1 %vm229_vm4, %v1889_v39  ;;  %4092 = vmatprep.mubr.msk.f32.mxu1 %vm4426_vm3, %v4423_v0 }
 0xb5a   :  { %v1733_v44 = vmul.f32 %v4341_v42, %v4337_v35  ;;  %4100 = vmatprep.subr.mxu1 %v4423_v0 }
 0xb5c   :  { %4088 = vmatmul.mubr.msk.f32.vlgmr.msra.gmra.mxu0 %vm229_vm4, %v1733_v44  ;;  %4093 = vmatmul.mubr.msk.f32.vlgmr.msra.gmra.mxu1 %vm229_vm4, %v1887_v45 }
 0xb5d   :  { %4096 = vmatpush3.xpose.msk.msra.mxu0 %vm229_vm4, %v1967_v43  ;;  %4097 = vmatprep.mubr.msk.f32.mxu0 %vm4426_vm3, %v4423_v0 }
 0xb5e   :  { %4105 = vmatprep.subr.mxu0 %v4423_v0  ;;  %4102 = vmatprep.mubr.msk.f32.mxu1 %vm4426_vm3, %v4423_v0 }
 0xb60   :  { %4098 = vmatmul.mubr.msk.f32.vlgmr.msra.gmra.mxu0 %vm229_vm4, %v1965_v46 }
 0xb61   :  { %4107 = vmatprep.mubr.msk.f32.mxu0 %vm4426_vm3, %v4423_v0 }
 0xc18   :  { %v4840_v47 = vpop.f32.mrf.mxu1 }
 0xc1a   :  { %v4084_v49 = vpop.f32.mrf.mxu1 }
 0xc1c   :  { %v4842_v51 = vpop.f32.mrf.mxu0  ;;  %v1960_v54 = vpop.f32.mrf.mxu1 }
 0xc1d   :  { %v2042_v55 = vmul.f32 0.5, %v1960_v54 }
 0xc1e   :  { %v4089_v56 = vpop.f32.mrf.mxu0  ;;  %v4094_v57 = vpop.f32.mrf.mxu1 }
 0xc1f   :  { %v2044_v58 = vsel %vm229_vm4, %v2042_v55, -inf }
 0xc20   :  { %v2038_v60 = vpop.f32.mrf.mxu0  ;;  %2045 = vmax.xlane.f32.xlu0 %v2044_v58 }
 0xc21   :  { %v2043_v62 = vmul.f32 0.5, %v2038_v60 }
 0xc22   :  { %v4099_v63 = vpop.f32.mrf.mxu0 }
 0xc23   :  { %v2047_v1 = vsel %vm229_vm4, %v2043_v62, -inf }
 0xc24   :  { %2048 = vmax.xlane.f32.xlu1 %v2047_v1 }
 0xc35   :  { %2066 = vrot.lane.b32.xlu1 %v4644_v48, %s4434_s24 }
 0xc36   :  { %2142 = vrot.lane.b32.xlu0 %v4651_v52, %s4434_s24 }
 0xc39   :  { %2220 = vrot.lane.b32.xlu1 %v4644_v48, %s4436_s26 }
 0xc3d   :  { %2298 = vrot.lane.b32.xlu1 %v4651_v52, %s4436_s26 }
 0xc41   :  { %2296 = vrot.lane.b32.xlu1 %v4659_v53, %s4436_s26 }
 0xca9   :  { %v2046_v2 = vpop.xlane.xlu0 %2045 }
 0xcaa   :  { %v2050_v3 = vsub.f32 %v2042_v55, %v2046_v2 }
 0xcac   :  { %v2052_v4 = vmul.f32 1.442695, %v2050_v3 }
 0xcad   :  { %v2049_v5 = vpop.xlane.xlu1 %2048  ;;  %v2143_v6 = vpop.permute.xlu0 %2142 }
 0xcae   :  { %4342 = vpow2.f32 %v2052_v4  ;;  %v2051_v7 = vsub.f32 %v2043_v62, %v2049_v5  ;;  %4106 = vmatpush3.msra.mxu0 %v2143_v6 }
 0xcaf   :  { %4115 = vmatprep.subr.mxu0 %v4423_v0 }
 0xcb0   :  { %v2054_v8 = vmul.f32 1.442695, %v2051_v7 }
 0xcb1   :  { %v2067_v10 = vpop.permute.xlu1 %2066 }
 0xcb2   :  { %4344 = vpow2.f32 %v2054_v8  ;;  %4101 = vmatpush3.msra.mxu1 %v2067_v10 }
 0xcb3   :  { %4110 = vmatprep.subr.mxu1 %v4423_v0 }
 0xcb5   :  { %v2221_v18 = vpop.permute.xlu1 %2220 }
 0xcb9   :  { %v2299_v24 = vpop.permute.xlu1 %2298 }
 0xcbb   :  { %v4343_v12 = vpop.eup %4342 }
 0xcbc   :  { %v2056_v13 = vsel %vm229_vm4, %v4343_v12, 0.0 }
 0xcbd   :  { %2057 = vadd.xlane.f32.xlu0 %v2056_v13  ;;  %v2297_v27 = vpop.permute.xlu1 %2296 }
 0xcbf   :  { %v4345_v14 = vpop.eup %4344 }
 0xcc0   :  { %v2059_v15 = vsel %vm229_vm4, %v4345_v14, 0.0 }
 0xcc1   :  { %2060 = vadd.xlane.f32.xlu0 %v2059_v15 }
 0xcd7   :  { %2218 = vrot.lane.b32.xlu0 %v4648_v50, %s4436_s26 }
 0xd46   :  { %v2058_v16 = vpop.xlane.xlu0 %2057 }
 0xd47   :  { %4346 = vrcp.f32 %v2058_v16 }
 0xd4a   :  { %v2061_v17 = vpop.xlane.xlu0 %2060 }
 0xd4b   :  { %4348 = vrcp.f32 %v2061_v17 }
 0xd4e   :  { %v2219_v26 = vpop.permute.xlu0 %2218 }
 0xd54   :  { %v4347_v19 = vpop.eup %4346 }
 0xd55   :  { %v2064_v20 = vmul.f32 %v4347_v19, %v4343_v12 }
 0xd57   :  { %4103 = vmatmul.mubr.msk.f32.vlgmr.msra.gmra.mxu1 %vm229_vm4, %v2064_v20 }
 0xd58   :  { %v4349_v22 = vpop.eup %4348  ;;  %4111 = vmatpush3.xpose.msk.msra.mxu1 %vm229_vm4, %v2221_v18  ;;  %4112 = vmatprep.mubr.msk.f32.mxu1 %vm4426_vm3, %v4423_v0 }
 0xd59   :  { %v2065_v25 = vmul.f32 %v4349_v22, %v4345_v14  ;;  %4120 = vmatprep.subr.mxu1 %v4423_v0 }
 0xd5b   :  { %4108 = vmatmul.mubr.msk.f32.vlgmr.msra.gmra.mxu0 %vm229_vm4, %v2065_v25  ;;  %4113 = vmatmul.mubr.msk.f32.vlgmr.msra.gmra.mxu1 %vm229_vm4, %v2219_v26 }
 0xd5c   :  { %4116 = vmatpush3.xpose.msk.msra.mxu0 %vm229_vm4, %v2299_v24  ;;  %4117 = vmatprep.mubr.msk.f32.mxu0 %vm4426_vm3, %v4423_v0 }
 0xd5d   :  { %4125 = vmatprep.subr.mxu0 %v4423_v0  ;;  %4122 = vmatprep.mubr.msk.f32.mxu1 %vm4426_vm3, %v4423_v0 }
 0xd5f   :  { %4118 = vmatmul.mubr.msk.f32.vlgmr.msra.gmra.mxu0 %vm229_vm4, %v2297_v27 }
 0xd60   :  { %4127 = vmatprep.mubr.msk.f32.mxu0 %vm4426_vm3, %v4423_v0 }
 0xe17   :  { %v4874_v28 = vpop.f32.mrf.mxu1 }
 0xe19   :  { %v4104_v29 = vpop.f32.mrf.mxu1 }
 0xe1b   :  { %v4876_v30 = vpop.f32.mrf.mxu0  ;;  %v2292_v31 = vpop.f32.mrf.mxu1 }
 0xe1c   :  { %v2374_v33 = vmul.f32 0.5, %v2292_v31 }
 0xe1d   :  { %v4109_v35 = vpop.f32.mrf.mxu0  ;;  %v4114_v36 = vpop.f32.mrf.mxu1 }
 0xe1e   :  { %v2376_v37 = vsel %vm229_vm4, %v2374_v33, -inf }
 0xe1f   :  { %v2370_v38 = vpop.f32.mrf.mxu0  ;;  %2377 = vmax.xlane.f32.xlu0 %v2376_v37 }
 0xe20   :  { %v2375_v39 = vmul.f32 0.5, %v2370_v38 }
 0xe21   :  { %v4119_v40 = vpop.f32.mrf.mxu0 }
 0xe22   :  { %v2379_v41 = vsel %vm229_vm4, %v2375_v39, -inf }
 0xe23   :  { %2380 = vmax.xlane.f32.xlu1 %v2379_v41 }
 0xe34   :  { %2398 = vrot.lane.b32.xlu1 %v4648_v50, %s4437_s1 }
 0xe35   :  { %2474 = vrot.lane.b32.xlu0 %v4659_v53, %s4437_s1 }
 0xe38   :  { %2552 = vrot.lane.b32.xlu1 %v4648_v50, %s4438_s29 }
 0xe3c   :  { %2630 = vrot.lane.b32.xlu1 %v4659_v53, %s4438_s29 }
 0xe40   :  { %2628 = vrot.lane.b32.xlu1 %v4659_v53, %s4422_s28 }
 0xea8   :  { %v2378_v42 = vpop.xlane.xlu0 %2377 }
 0xea9   :  { %v2382_v43 = vsub.f32 %v2374_v33, %v2378_v42 }
 0xeab   :  { %v2384_v44 = vmul.f32 1.442695, %v2382_v43 }
 0xeac   :  { %v2381_v45 = vpop.xlane.xlu1 %2380  ;;  %v2475_v46 = vpop.permute.xlu0 %2474 }
 0xead   :  { %4350 = vpow2.f32 %v2384_v44  ;;  %v2383_v49 = vsub.f32 %v2375_v39, %v2381_v45  ;;  %4126 = vmatpush3.msra.mxu0 %v2475_v46 }
 0xeae   :  { %4135 = vmatprep.subr.mxu0 %v4423_v0 }
 0xeaf   :  { %v2386_v54 = vmul.f32 1.442695, %v2383_v49 }
 0xeb0   :  { %v2399_v55 = vpop.permute.xlu1 %2398 }
 0xeb1   :  { %4352 = vpow2.f32 %v2386_v54  ;;  %4121 = vmatpush3.msra.mxu1 %v2399_v55 }
 0xeb2   :  { %4130 = vmatprep.subr.mxu1 %v4423_v0 }
 0xeb4   :  { %v2553_v63 = vpop.permute.xlu1 %2552 }
 0xeb8   :  { %v2631_v4 = vpop.permute.xlu1 %2630 }
 0xeba   :  { %v4351_v56 = vpop.eup %4350 }
 0xebb   :  { %v2388_v57 = vsel %vm229_vm4, %v4351_v56, 0.0 }
 0xebc   :  { %2389 = vadd.xlane.f32.xlu0 %v2388_v57  ;;  %v2629_v6 = vpop.permute.xlu1 %2628 }
 0xebe   :  { %v4353_v53 = vpop.eup %4352 }
 0xebf   :  { %v2391_v58 = vsel %vm229_vm4, %v4353_v53, 0.0 }
 0xec0   :  { %2392 = vadd.xlane.f32.xlu0 %v2391_v58 }
 0xed6   :  { %2550 = vrot.lane.b32.xlu0 %v4648_v50, %s4422_s28 }
 0xf45   :  { %v2390_v60 = vpop.xlane.xlu0 %2389 }
 0xf46   :  { %4354 = vrcp.f32 %v2390_v60 }
 0xf49   :  { %v2393_v62 = vpop.xlane.xlu0 %2392 }
 0xf4a   :  { %4356 = vrcp.f32 %v2393_v62 }
 0xf4d   :  { %v2551_v50 = vpop.permute.xlu0 %2550 }
 0xf53   :  { %v4355_v1 = vpop.eup %4354 }
 0xf54   :  { %v2396_v2 = vmul.f32 %v4355_v1, %v4351_v56 }
 0xf56   :  { %4123 = vmatmul.mubr.msk.f32.vlgmr.msra.gmra.mxu1 %vm229_vm4, %v2396_v2 }
 0xf57   :  { %v4357_v3 = vpop.eup %4356  ;;  %4131 = vmatpush3.xpose.msk.msra.mxu1 %vm229_vm4, %v2553_v63  ;;  %4132 = vmatprep.mubr.msk.f32.mxu1 %vm4426_vm3, %v4423_v0 }
 0xf58   :  { %v2397_v5 = vmul.f32 %v4357_v3, %v4353_v53  ;;  %4140 = vmatprep.subr.mxu1 %v4423_v0 }
 0xf5a   :  { %4128 = vmatmul.mubr.msk.f32.vlgmr.msra.gmra.mxu0 %vm229_vm4, %v2397_v5  ;;  %4133 = vmatmul.mubr.msk.f32.vlgmr.msra.gmra.mxu1 %vm229_vm4, %v2551_v50 }
 0xf5b   :  { %4136 = vmatpush3.xpose.msk.msra.mxu0 %vm229_vm4, %v2631_v4  ;;  %4137 = vmatprep.mubr.msk.f32.mxu0 %vm4426_vm3, %v4423_v0 }
 0xf5c   :  { %4145 = vmatprep.subr.mxu0 %v4423_v0  ;;  %4142 = vmatprep.mubr.msk.f32.mxu1 %vm4426_vm3, %v4423_v0 }
 0xf5e   :  { %4138 = vmatmul.mubr.msk.f32.vlgmr.msra.gmra.mxu0 %vm229_vm4, %v2629_v6 }
 0xf5f   :  { %4147 = vmatprep.mubr.msk.f32.mxu0 %vm4426_vm3, %v4423_v0 }
0x1016   :  { %v2470_v7 = vpop.f32.mrf.mxu1 }
0x1018   :  { %v4124_v8 = vpop.f32.mrf.mxu1 }
0x101a   :  { %v2546_v10 = vpop.f32.mrf.mxu0  ;;  %v2624_v12 = vpop.f32.mrf.mxu1 }
0x101b   :  { %v2706_v13 = vmul.f32 0.5, %v2624_v12 }
0x101c   :  { %v4129_v14 = vpop.f32.mrf.mxu0  ;;  %v4134_v15 = vpop.f32.mrf.mxu1 }
0x101d   :  { %v2708_v16 = vsel %vm229_vm4, %v2706_v13, -inf }
0x101e   :  { %v2702_v17 = vpop.f32.mrf.mxu0  ;;  %2709 = vmax.xlane.f32.xlu0 %v2708_v16 }
0x101f   :  { %v2707_v18 = vmul.f32 0.5, %v2702_v17 }
0x1020   :  { %v4139_v19 = vpop.f32.mrf.mxu0 }
0x1021   :  { %v2711_v20 = vsel %vm229_vm4, %v2707_v18, -inf }
0x1022   :  { %2712 = vmax.xlane.f32.xlu1 %v2711_v20 }
0x1033   :  { %2730 = vrot.lane.b32.xlu1 %v4644_v48, %s4438_s29 }
0x1037   :  { %2916 = vrot.lane.b32.xlu1 %v4804_v9, %s4422_s28 }
0x103b   :  { %2918 = vrot.lane.b32.xlu1 %v4806_v11, %s4422_s28 }
0x103f   :  { %2884 = vrot.lane.b32.xlu1 %v4770_v32, %s4422_s28 }
0x1043   :  { %2892 = vrot.lane.b32.xlu1 %v4840_v47, %s4435_s25 }
0x1047   :  { %2894 = vrot.lane.b32.xlu1 %v4842_v51, %s4435_s25 }
0x10a7   :  { %v2710_v22 = vpop.xlane.xlu0 %2709 }
0x10a8   :  { %v2714_v24 = vsub.f32 %v2706_v13, %v2710_v22 }
0x10aa   :  { %v2716_v25 = vmul.f32 1.442695, %v2714_v24 }
0x10ab   :  { %v2713_v26 = vpop.xlane.xlu1 %2712 }
0x10ac   :  { %4358 = vpow2.f32 %v2716_v25  ;;  %v2715_v48 = vsub.f32 %v2707_v18, %v2713_v26  ;;  %v3006_v25 = vld [vmem:[%s5204_s3] sm:$0xff] }
0x10ae   :  { %v2718_v27 = vmul.f32 1.442695, %v2715_v48 }
0x10af   :  { %v2731_v9 = vpop.permute.xlu1 %2730 }
0x10b0   :  { %4360 = vpow2.f32 %v2718_v27  ;;  %4141 = vmatpush3.msra.mxu1 %v2731_v9 }
0x10b1   :  { %4150 = vmatprep.subr.mxu1 %v4423_v0 }
0x10b3   :  { %v2917_v39 = vpop.permute.xlu1 %2916 }
0x10b7   :  { %v2919_v40 = vpop.permute.xlu1 %2918 }
0x10b8   :  { %v2939_v2 = vsel %vm229_vm4, %v4736_v61, %v2919_v40  ;;  %v3007_v61 = vld [vmem:[%s5205_s4] sm:$0xff] }
0x10b9   :  { %v4359_v11 = vpop.eup %4358 }
0x10ba   :  { %v2720_v32 = vsel %vm229_vm4, %v4359_v11, 0.0 }
0x10bb   :  { %2721 = vadd.xlane.f32.xlu0 %v2720_v32  ;;  %v2885_v41 = vpop.permute.xlu1 %2884 }
0x10bc   :  { %v2906_v55 = vsel %vm229_vm4, %v4700_v21, %v2885_v41  ;;  %v2938_v21 = vsel %vm229_vm4, %v4734_v59, %v2917_v39  ;;  %v4443_v59 = vmov 0  }
0x10bd   :  { %v4361_v47 = vpop.eup %4360  ;;  %4301 = vset.pattern.permute.xlu0 %v4443_v59  ;;  %v3296_v59 = vld [vmem:[%s5208_s7 + $0x28] sm:$0xff] }
0x10be   :  { %v2723_v29 = vsel %vm229_vm4, %v4361_v47, 0.0 }
0x10bf   :  { %2724 = vadd.xlane.f32.xlu0 %v2723_v29  ;;  %v2893_v43 = vpop.permute.xlu1 %2892  ;;  %v3168_v29 = vld [vmem:[%s5206_s5 + $0x58] sm:$0xff] }
0x10c0   :  { %v2909_v56 = vsel %vm2908_vm5, %v2906_v55, %v2893_v43 }
0x10c3   :  { %v2895_v45 = vpop.permute.xlu1 %2894 }
0x10d5   :  { %2806 = vrot.lane.b32.xlu0 %v4651_v52, %s4438_s29 }
0x10d9   :  { %2924 = vrot.lane.b32.xlu0 %v4874_v28, %s4435_s25 }
0x10dd   :  { %2926 = vrot.lane.b32.xlu0 %v4876_v30, %s4435_s25 }
0x10e1   :  { %2886 = vrot.lane.b32.xlu0 %v4772_v34, %s4422_s28 }
0x1144   :  { %v2722_v51 = vpop.xlane.xlu0 %2721 }
0x1145   :  { %4362 = vrcp.f32 %v2722_v51  ;;  %v3167_v51 = vld [vmem:[%s5206_s5 + $0x50] sm:$0xff] }
0x1148   :  { %v2725_v31 = vpop.xlane.xlu0 %2724 }
0x1149   :  { %4364 = vrcp.f32 %v2725_v31  ;;  %v3165_v31 = vld [vmem:[%s5206_s5 + $0x40] sm:$0xff] }
0x114c   :  { %v2807_v33 = vpop.permute.xlu0 %2806 }
0x114d   :  { %4146 = vmatpush3.msra.mxu0 %v2807_v33  ;;  %v3164_v33 = vld [vmem:[%s5206_s5 + $0x38] sm:$0xff] }
0x114e   :  { %4165 = vmatprep.subr.mxu0 %v4423_v0 }
0x1150   :  { %v2925_v42 = vpop.permute.xlu0 %2924 }
0x1152   :  { %v4363_v35 = vpop.eup %4362 }
0x1153   :  { %v2728_v36 = vmul.f32 %v4363_v35, %v4359_v11  ;;  %v3163_v35 = vld [vmem:[%s5206_s5 + $0x30] sm:$0xff] }
0x1154   :  { %v2927_v44 = vpop.permute.xlu0 %2926 }
0x1155   :  { %4143 = vmatmul.mubr.msk.f32.vlgmr.msra.gmra.mxu1 %vm229_vm4, %v2728_v36  ;;  %v2941_v3 = vsel %vm2908_vm5, %v2939_v2, %v2927_v44  ;;  %v3162_v36 = vld [vmem:[%s5206_s5 + $0x28] sm:$0xff]  ;;  %v3299_v2 = vld [vmem:[%s5208_s7 + $0x40] sm:$0xff] }
0x1156   :  { %v4365_v52 = vpop.eup %4364  ;;  %4162 = vmatprep.mubr.msk.f32.mxu1 %vm4426_vm3, %v4423_v0 }
0x1157   :  { %v2729_v28 = vmul.f32 %v4365_v52, %v4361_v47  ;;  %v3161_v52 = vld [vmem:[%s5206_s5 + $0x20] sm:$0xff] }
0x1158   :  { %v2887_v46 = vpop.permute.xlu0 %2886 }
0x1159   :  { %4148 = vmatmul.mubr.msk.f32.vlgmr.msra.gmra.mxu0 %vm229_vm4, %v2729_v28  ;;  %v2907_v53 = vsel %vm229_vm4, %v4702_v23, %v2887_v46  ;;  %v2940_v23 = vsel %vm2908_vm5, %v2938_v21, %v2925_v42  ;;  %v3160_v28 = vld [vmem:[%s5206_s5 + $0x18] sm:$0xff] }
0x115a   :  { %4177 = vmatprep.mubr.msk.f32.mxu0 %vm4426_vm3, %v4423_v0  ;;  %v2910_v62 = vsel %vm2908_vm5, %v2907_v53, %v2895_v45  ;;  %v3302_v21 = vld [vmem:[%s5208_s7 + $0x58] sm:$0xff] }
0x1215   :  { %v2802_v34 = vpop.f32.mrf.mxu1 }
0x1216   :  { %2932 = vrot.lane.b32.xlu1 %v2802_v34, %s4431_s21  ;;  %v3159_v34 = vld [vmem:[%s5206_s5 + $0x10] sm:$0xff] }
0x1217   :  { %v4144_v30 = vpop.f32.mrf.mxu1 }
0x1219   :  { %v2878_v37 = vpop.f32.mrf.mxu0 }
0x121a   :  { %2934 = vrot.lane.b32.xlu0 %v2878_v37, %s4431_s21  ;;  %2902 = vrot.lane.b32.xlu1 %v2546_v10, %s4431_s21  ;;  %v3158_v37 = vld [vmem:[%s5206_s5 + $0x8] sm:$0xff] }
0x121b   :  { %v4149_v38 = vpop.f32.mrf.mxu0 }
0x121c   :  { %v3157_v38 = vld [vmem:[%s5206_s5] sm:$0xff] }
0x121e   :  { %2900 = vrot.lane.b32.xlu0 %v2470_v7, %s4431_s21  ;;  %s4444_s21 = smov [#allocation5]  }
0x121f   :  { %s3782_s22 = sshll.u32 %s4444_s21, 4  ;;  %s3783_s22 = int_to_ptr.vmem [resolvable:$true] %s3782_s22 }
0x1220   :  { %p4401_p6 = scmp.lt.s32.totalorder %s3783_s22, %s3783_s22 }
0x1288   :  { %v2933_v49 = vpop.permute.xlu1 %2932 }
0x1289   :  { %v2942_v1 = vsel %vm2911_vm6, %v2940_v23, %v2933_v49  ;;  %v3301_v23 = vld [vmem:[%s5208_s7 + $0x50] sm:$0xff] }
0x128c   :  { %v2935_v54 = vpop.permute.xlu0 %2934  ;;  %v2903_v60 = vpop.permute.xlu1 %2902 }
0x128d   :  { %v4954_v63 = vsel %vm2911_vm6, %v2910_v62, %v2903_v60  ;;  %v2943_v4 = vsel %vm2911_vm6, %v2941_v3, %v2935_v54  ;;  %v3298_v3 = vld [vmem:[%s5208_s7 + $0x38] sm:$0xff] }
0x1290   :  { %v2901_v57 = vpop.permute.xlu0 %2900 }
0x1291   :  { %v2912_v58 = vsel %vm2911_vm6, %v2909_v56, %v2901_v57 }
0x1292   :  { %2977 = vrot.lane.b32.xlu0 %v2912_v58, %s4439_s2  ;;  %2989 = vrot.lane.b32.xlu1 %v2912_v58, %s4440_s0 }
0x1296   :  { %2993 = vrot.lane.b32.xlu1 %v4954_v63, %s4440_s0  ;;  %2981 = vrot.lane.b32.xlu0 %v4954_v63, %s4439_s2 }
0x129a   :  { %2991 = vrot.lane.b32.xlu1 %v2942_v1, %s4440_s0  ;;  %2979 = vrot.lane.b32.xlu0 %v2942_v1, %s4439_s2 }
0x129e   :  { %2962 = vrot.lane.b32.xlu1 %v2942_v1, %s4441_s18  ;;  %2950 = vrot.lane.b32.xlu0 %v2942_v1, %s4442_s19 }
0x12a2   :  { %2995 = vrot.lane.b32.xlu1 %v2943_v4, %s4440_s0  ;;  %2983 = vrot.lane.b32.xlu0 %v2943_v4, %s4439_s2 }
0x12a6   :  { %2960 = vrot.lane.b32.xlu1 %v2912_v58, %s4441_s18  ;;  %2948 = vrot.lane.b32.xlu0 %v2912_v58, %s4442_s19 }
0x12aa   :  { %2966 = vrot.lane.b32.xlu1 %v2943_v4, %s4441_s18  ;;  %2954 = vrot.lane.b32.xlu0 %v2943_v4, %s4442_s19 }
0x12ae   :  { %2964 = vrot.lane.b32.xlu1 %v4954_v63, %s4441_s18  ;;  %2952 = vrot.lane.b32.xlu0 %v4954_v63, %s4442_s19 }
0x12b2   :  { %3010 = vperm.xlu0 %4301, %v3007_v61   ;;  %v3295_v61 = vld [vmem:[%s5208_s7 + $0x20] sm:$0xff] }
0x1304   :  { %v2978_v5 = vpop.permute.xlu0 %2977  ;;  %v2990_v50 = vpop.permute.xlu1 %2989 }
0x1305   :  { %v3002_v13 = vsel %vm3001_vm7, %v2978_v5, %v2990_v50  ;;  %v3294_v5 = vld [vmem:[%s5208_s7 + $0x18] sm:$0xff]  ;;  %v3293_v50 = vld [vmem:[%s5208_s7 + $0x10] sm:$0xff] }
0x1308   :  { %v2982_v6 = vpop.permute.xlu0 %2981  ;;  %v2994_v7 = vpop.permute.xlu1 %2993 }
0x1309   :  { %v3004_v20 = vsel %vm3001_vm7, %v2982_v6, %v2994_v7  ;;  %v3292_v6 = vld [vmem:[%s5208_s7 + $0x8] sm:$0xff]  ;;  %v3846_v7 = vld [vmem:[%s5207_s6] ss:$0 sm:$0xff] }
0x130c   :  { %v2980_v8 = vpop.permute.xlu0 %2979  ;;  %v2992_v10 = vpop.permute.xlu1 %2991 }
0x130d   :  { %v3003_v12 = vsel %vm3001_vm7, %v2980_v8, %v2992_v10  ;;  %v3291_v8 = vld [vmem:[%s5208_s7] sm:$0xff] }
0x130e   :  { %4151 = vmatpush3.msra.mxu1 %v3003_v12 }
0x130f   :  { %4152 = vmatprep.subr.mxu1 %v4423_v0 }
0x1310   :  { %v2951_v14 = vpop.permute.xlu0 %2950  ;;  %4153 = vmatpush3.msra.mxu1 %v3002_v13  ;;  %v2963_v15 = vpop.permute.xlu1 %2962 }
0x1311   :  { %4154 = vmatprep.subr.mxu1 %v4423_v0  ;;  %v2974_v18 = vsel %vm2972_vm8, %v2951_v14, %v2963_v15 }
0x1312   :  { %4155 = vmatpush3.msra.mxu1 %v2942_v1  ;;  %v3300_v1 = vld [vmem:[%s5208_s7 + $0x48] sm:$0xff] }
0x1313   :  { %4156 = vmatprep.subr.mxu1 %v4423_v0 }
0x1314   :  { %v2984_v16 = vpop.permute.xlu0 %2983  ;;  %4157 = vmatpush3.msra.mxu1 %v2912_v58  ;;  %v2996_v17 = vpop.permute.xlu1 %2995 }
0x1315   :  { %v3005_v19 = vsel %vm3001_vm7, %v2984_v16, %v2996_v17  ;;  %4158 = vmatprep.subr.mxu1 %v4423_v0 }
0x1316   :  { %4159 = vmatpush3.msra.mxu1 %v2974_v18  ;;  %4166 = vmatpush3.msra.mxu0 %v3005_v19 }
0x1317   :  { %4167 = vmatprep.subr.mxu0 %v4423_v0  ;;  %4160 = vmatprep.subr.mxu1 %v4423_v0 }
0x1318   :  { %v2949_v22 = vpop.permute.xlu0 %2948  ;;  %4168 = vmatpush3.msra.mxu0 %v3004_v20  ;;  %v2961_v24 = vpop.permute.xlu1 %2960 }
0x1319   :  { %v2973_v26 = vsel %vm2972_vm8, %v2949_v22, %v2961_v24  ;;  %4169 = vmatprep.subr.mxu0 %v4423_v0 }
0x131a   :  { %4161 = vmatpush3.msra.mxu1 %v2973_v26  ;;  %4170 = vmatpush3.msra.mxu0 %v2943_v4  ;;  %v3297_v4 = vld [vmem:[%s5208_s7 + $0x30] sm:$0xff] }
0x131b   :  { %4163 = vmatmul.mubr.msk.f32.vlgmr.msra.gmra.mxu1 %vm3013_vm9, %v3006_v25  ;;  %4171 = vmatprep.subr.mxu0 %v4423_v0 }
0x131c   :  { %v2955_v48 = vpop.permute.xlu0 %2954  ;;  %4172 = vmatpush3.msra.mxu0 %v4954_v63  ;;  %v2967_v27 = vpop.permute.xlu1 %2966  ;;  %4180 = vmatprep.subr.mxu1 %v3168_v29 }
0x131d   :  { %v2976_v9 = vsel %vm2972_vm8, %v2955_v48, %v2967_v27  ;;  %4173 = vmatprep.subr.mxu0 %v4423_v0  ;;  %4181 = vmatpush3.msra.mxu1 %v3168_v29 }
0x131e   :  { %4174 = vmatpush3.msra.mxu0 %v2976_v9  ;;  %4182 = vmatprep.subr.mxu1 %v3167_v51 }
0x131f   :  { %4175 = vmatprep.subr.mxu0 %v4423_v0  ;;  %v3166_v0 = vld [vmem:[%s5206_s5 + $0x48] sm:$0xff]  ;;  %4183 = vmatpush3.msra.mxu1 %v3167_v51 }
0x1320   :  { %v2953_v11 = vpop.permute.xlu0 %2952  ;;  %v2965_v32 = vpop.permute.xlu1 %2964  ;;  %4184 = vmatprep.subr.mxu1 %v3166_v0 }
0x1321   :  { %v2975_v47 = vsel %vm2972_vm8, %v2953_v11, %v2965_v32  ;;  %4185 = vmatpush3.msra.mxu1 %v3166_v0  ;;  %v3849_v32 = vld [vmem:[%s5209_s8] ss:$0 sm:$0xff] }
0x1322   :  { %4176 = vmatpush3.msra.mxu0 %v2975_v47  ;;  %4186 = vmatprep.subr.mxu1 %v3165_v31 }
0x1323   :  { %4178 = vmatmul.mubr.msk.f32.vlgmr.msra.gmra.mxu0 %vm3013_vm9, %v3006_v25  ;;  %4187 = vmatpush3.msra.mxu1 %v3165_v31 }
0x1324   :  { %4188 = vmatprep.subr.mxu1 %v3164_v33  ;;  %4207 = vmatprep.subr.mxu0 %v3302_v21 }
0x1325   :  { %4189 = vmatpush3.msra.mxu1 %v3164_v33  ;;  %4208 = vmatpush3.msra.mxu0 %v3302_v21 }
0x1326   :  { %4190 = vmatprep.subr.mxu1 %v3163_v35  ;;  %4209 = vmatprep.subr.mxu0 %v3301_v23 }
0x1327   :  { %4191 = vmatpush3.msra.mxu1 %v3163_v35  ;;  %4210 = vmatpush3.msra.mxu0 %v3301_v23 }
0x1328   :  { %4192 = vmatprep.subr.mxu1 %v3162_v36  ;;  %4211 = vmatprep.subr.mxu0 %v3300_v1 }
0x1329   :  { %4193 = vmatpush3.msra.mxu1 %v3162_v36  ;;  %4212 = vmatpush3.msra.mxu0 %v3300_v1 }
0x132a   :  { %4194 = vmatprep.subr.mxu1 %v3161_v52  ;;  %4213 = vmatprep.subr.mxu0 %v3299_v2 }
0x132b   :  { %4195 = vmatpush3.msra.mxu1 %v3161_v52  ;;  %4214 = vmatpush3.msra.mxu0 %v3299_v2 }
0x132c   :  { %4196 = vmatprep.subr.mxu1 %v3160_v28  ;;  %4215 = vmatprep.subr.mxu0 %v3298_v3 }
0x132d   :  { %4197 = vmatpush3.msra.mxu1 %v3160_v28  ;;  %v3011_v30 = vpop.permute.xlu0 %3010  ;;  %4216 = vmatpush3.msra.mxu0 %v3298_v3 }
0x132e   :  { %4198 = vmatprep.subr.mxu1 %v3159_v34  ;;  %4217 = vmatprep.subr.mxu0 %v3297_v4 }
0x132f   :  { %4199 = vmatpush3.msra.mxu1 %v3159_v34  ;;  %4218 = vmatpush3.msra.mxu0 %v3297_v4 }
0x1330   :  { %4200 = vmatprep.subr.mxu1 %v3158_v37  ;;  %4219 = vmatprep.subr.mxu0 %v3296_v59 }
0x1331   :  { %4201 = vmatpush3.msra.mxu1 %v3158_v37  ;;  %4220 = vmatpush3.msra.mxu0 %v3296_v59 }
0x1332   :  { %4202 = vmatprep.subr.mxu1 %v3157_v38  ;;  %4221 = vmatprep.subr.mxu0 %v3295_v61 }
0x1333   :  { %4203 = vmatpush3.msra.mxu1 %v3157_v38  ;;  %4222 = vmatpush3.msra.mxu0 %v3295_v61 }
0x1334   :  { %4223 = vmatprep.subr.mxu0 %v3294_v5 }
0x1335   :  { %4224 = vmatpush3.msra.mxu0 %v3294_v5 }
0x1336   :  { %4225 = vmatprep.subr.mxu0 %v3293_v50 }
0x1337   :  { %4226 = vmatpush3.msra.mxu0 %v3293_v50 }
0x1338   :  { %4227 = vmatprep.subr.mxu0 %v3292_v6 }
0x1339   :  { %4228 = vmatpush3.msra.mxu0 %v3292_v6 }
0x133a   :  { %4229 = vmatprep.subr.mxu0 %v3291_v8 }
0x133b   :  { %4230 = vmatpush3.msra.mxu0 %v3291_v8 }
0x13db   :  { %v3083_v39 = vpop.f32.mrf.mxu1 }
0x13dc   :  { %v3084_v40 = vadd.f32 %v3083_v39, %v3011_v30 }
0x13dd   :  { %v4164_v41 = vpop.f32.mrf.mxu1 }
0x13de   :  { %v3178_v42 = vrot.slane %v3084_v40, 1  ;;  %3184 = vrot.lane.b32.xlu1 %v3084_v40, %s4424_s20  ;;  %v3172_v49 = vrot.slane %v3084_v40, 7  ;;  %v3473_v41 = vld [vmem:[%s5212_s11 + $0x28] sm:$0xff] }
0x13df   :  { %4234 = vmatprep.subr.mxu1 %v3473_v41 }
0x13e0   :  { %3192 = vrot.lane.b32.xlu0 %v3178_v42, %s4425_s30  ;;  %v3472_v42 = vld [vmem:[%s5212_s11 + $0x20] sm:$0xff] }
0x13e3   :  { %v3153_v43 = vpop.f32.mrf.mxu0 }
0x13e4   :  { %v3154_v44 = vadd.f32 %v3153_v43, %v3011_v30 }
0x13e5   :  { %v4179_v45 = vpop.f32.mrf.mxu0 }
0x13e6   :  { %3186 = vrot.lane.b32.xlu1 %v3154_v44, %s4424_s20  ;;  %v3179_v46 = vrot.slane %v3154_v44, 1  ;;  %v3173_v58 = vrot.slane %v3154_v44, 7 }
0x13ea   :  { %3194 = vrot.lane.b32.xlu1 %v3179_v46, %s4425_s30 }
0x1450   :  { %v3185_v54 = vpop.permute.xlu1 %3184 }
0x1451   :  { %v3198_v55 = vsel %vm128_vm0, %v3172_v49, %v3185_v54 }
0x1452   :  { %v3193_v56 = vpop.permute.xlu0 %3192 }
0x1453   :  { %v3200_v57 = vsel %vm131_vm1, %v3198_v55, %v3193_v56  ;;  %v3471_v55 = vld [vmem:[%s5212_s11 + $0x18] sm:$0xff]  ;;  %v3470_v56 = vld [vmem:[%s5212_s11 + $0x10] sm:$0xff] }
0x1454   :  { %4204 = vmatprep.mubr.msk.f32.mxu1 %vm145_vm2, %v3200_v57  ;;  %v3469_v57 = vld [vmem:[%s5212_s11 + $0x8] sm:$0xff] }
0x1458   :  { %v3187_v53 = vpop.permute.xlu1 %3186 }
0x1459   :  { %v3199_v60 = vsel %vm128_vm0, %v3173_v58, %v3187_v53  ;;  %v3468_v53 = vld [vmem:[%s5212_s11] sm:$0xff] }
0x145c   :  { %v3195_v62 = vpop.permute.xlu1 %3194 }
0x145d   :  { %v3201_v63 = vsel %vm131_vm1, %v3199_v60, %v3195_v62  ;;  %v3852_v60 = vld [vmem:[%s5210_s9] ss:$0 sm:$0xff] }
0x145e   :  { %4205 = vmatmul.mubr.msk.f32.vlgmr.msra.gmra.mxu1 %vm145_vm2, %v3201_v63  ;;  %v3853_v63 = vld [vmem:[%s5211_s10] ss:$0 sm:$0xff] }
0x145f   :  { %4235 = vmatpush3.msra.mxu1 %v3473_v41 }
0x1460   :  { %4236 = vmatprep.subr.mxu1 %v3472_v42 }
0x1461   :  { %4237 = vmatpush3.msra.mxu1 %v3472_v42  ;;  %v3857_v42 = vld [vmem:[%s5215_s14] ss:$0 sm:$0xff] }
0x1462   :  { %4238 = vmatprep.subr.mxu1 %v3471_v55 }
0x1463   :  { %4239 = vmatpush3.msra.mxu1 %v3471_v55 }
0x1464   :  { %4240 = vmatprep.subr.mxu1 %v3470_v56 }
0x1465   :  { %4241 = vmatpush3.msra.mxu1 %v3470_v56 }
0x1466   :  { %4242 = vmatprep.subr.mxu1 %v3469_v57 }
0x1467   :  { %4243 = vmatpush3.msra.mxu1 %v3469_v57 }
0x1468   :  { %4244 = vmatprep.subr.mxu1 %v3468_v53 }
0x1469   :  { %4245 = vmatpush3.msra.mxu1 %v3468_v53 }
0x151e   :  { %v4206_v10 = vpop.f32.mrf.mxu1 }
0x151f   :  { %v3286_v12 = vadd.f32 %v4206_v10, %v3846_v7 }
0x1520   :  { %v3280_v13 = vpop.f32.mrf.mxu1 }
0x1521   :  { %v3290_v14 = vmax.f32 %v3286_v12, 0.0  ;;  %v3281_v15 = vadd.f32 %v3846_v7, %v3280_v13 }
0x1523   :  { %v3289_v16 = vmax.f32 %v3281_v15, 0.0  ;;  %3320 = vrot.lane.b32.xlu1 %v3290_v14, %s4424_s20  ;;  %v3313_v17 = vrot.slane %v3290_v14, 1  ;;  %v3307_v24 = vrot.slane %v3290_v14, 7 }
0x1525   :  { %3318 = vrot.lane.b32.xlu0 %v3289_v16, %s4424_s20  ;;  %v3312_v18 = vrot.slane %v3289_v16, 1  ;;  %v3306_v22 = vrot.slane %v3289_v16, 7  ;;  %v3607_v16 = vld [vmem:[%s5214_s13 + $0x58] sm:$0xff] }
0x1526   :  { %4249 = vmatprep.subr.mxu0 %v3607_v16 }
0x1527   :  { %3328 = vrot.lane.b32.xlu1 %v3313_v17, %s4425_s30  ;;  %v3606_v17 = vld [vmem:[%s5214_s13 + $0x50] sm:$0xff] }
0x1529   :  { %3326 = vrot.lane.b32.xlu0 %v3312_v18, %s4425_s30  ;;  %v3605_v18 = vld [vmem:[%s5214_s13 + $0x48] sm:$0xff] }
0x1595   :  { %v3321_v19 = vpop.permute.xlu1 %3320 }
0x1596   :  { %v3333_v27 = vsel %vm128_vm0, %v3307_v24, %v3321_v19  ;;  %v3604_v19 = vld [vmem:[%s5214_s13 + $0x40] sm:$0xff]  ;;  %v3601_v24 = vld [vmem:[%s5214_s13 + $0x28] sm:$0xff] }
0x1597   :  { %v3319_v20 = vpop.permute.xlu0 %3318 }
0x1598   :  { %v3332_v26 = vsel %vm128_vm0, %v3306_v22, %v3319_v20  ;;  %v3603_v20 = vld [vmem:[%s5214_s13 + $0x38] sm:$0xff]  ;;  %v3602_v22 = vld [vmem:[%s5214_s13 + $0x30] sm:$0xff] }
0x1599   :  { %v3329_v25 = vpop.permute.xlu1 %3328 }
0x159a   :  { %v3335_v11 = vsel %vm131_vm1, %v3333_v27, %v3329_v25  ;;  %v3600_v25 = vld [vmem:[%s5214_s13 + $0x20] sm:$0xff]  ;;  %v3597_v27 = vld [vmem:[%s5214_s13 + $0x8] sm:$0xff] }
0x159b   :  { %v3327_v48 = vpop.permute.xlu0 %3326 }
0x159c   :  { %v3334_v9 = vsel %vm131_vm1, %v3332_v26, %v3327_v48  ;;  %v3599_v26 = vld [vmem:[%s5214_s13 + $0x18] sm:$0xff]  ;;  %v3598_v48 = vld [vmem:[%s5214_s13 + $0x10] sm:$0xff] }
0x159d   :  { %4231 = vmatprep.mubr.msk.f32.mxu0 %vm145_vm2, %v3334_v9  ;;  %v3854_v9 = vld [vmem:[%s5213_s12] ss:$0 sm:$0xff] }
0x159e   :  { %4232 = vmatmul.mubr.msk.f32.vlgmr.msra.gmra.mxu0 %vm145_vm2, %v3335_v11  ;;  %v3596_v11 = vld [vmem:[%s5214_s13] sm:$0xff] }
0x159f   :  { %4250 = vmatpush3.msra.mxu0 %v3607_v16 }
0x15a0   :  { %4251 = vmatprep.subr.mxu0 %v3606_v17 }
0x15a1   :  { %4252 = vmatpush3.msra.mxu0 %v3606_v17 }
0x15a2   :  { %4253 = vmatprep.subr.mxu0 %v3605_v18 }
0x15a3   :  { %4254 = vmatpush3.msra.mxu0 %v3605_v18  ;;  %v4375_v18 = vld [vmem:[#allocation2 + $0x8] sm:$0xff] }
0x15a4   :  { %4255 = vmatprep.subr.mxu0 %v3604_v19 }
0x15a5   :  { %4256 = vmatpush3.msra.mxu0 %v3604_v19 }
0x15a6   :  { %4257 = vmatprep.subr.mxu0 %v3603_v20 }
0x15a7   :  { %4258 = vmatpush3.msra.mxu0 %v3603_v20 }
0x15a8   :  { %4259 = vmatprep.subr.mxu0 %v3602_v22 }
0x15a9   :  { %4260 = vmatpush3.msra.mxu0 %v3602_v22 }
0x15aa   :  { %4261 = vmatprep.subr.mxu0 %v3601_v24 }
0x15ab   :  { %4262 = vmatpush3.msra.mxu0 %v3601_v24 }
0x15ac   :  { %4263 = vmatprep.subr.mxu0 %v3600_v25 }
0x15ad   :  { %4264 = vmatpush3.msra.mxu0 %v3600_v25 }
0x15ae   :  { %4265 = vmatprep.subr.mxu0 %v3599_v26 }
0x15af   :  { %4266 = vmatpush3.msra.mxu0 %v3599_v26 }
0x15b0   :  { %4267 = vmatprep.subr.mxu0 %v3598_v48 }
0x15b1   :  { %4268 = vmatpush3.msra.mxu0 %v3598_v48 }
0x15b2   :  { %4269 = vmatprep.subr.mxu0 %v3597_v27 }
0x15b3   :  { %4270 = vmatpush3.msra.mxu0 %v3597_v27 }
0x15b4   :  { %4271 = vmatprep.subr.mxu0 %v3596_v11 }
0x15b5   :  { %4272 = vmatpush3.msra.mxu0 %v3596_v11 }
0x165e   :  { %v4233_v47 = vpop.f32.mrf.mxu0 }
0x165f   :  { %v3420_v29 = vadd.f32 %v4233_v47, %v3849_v32 }
0x1660   :  { %v3414_v51 = vpop.f32.mrf.mxu0 }
0x1661   :  { %v3415_v0 = vadd.f32 %v3849_v32, %v3414_v51  ;;  %v3428_v31 = vsel %vm2908_vm5, %v3420_v29, 0.0 }
0x1662   :  { %3429 = vadd.xlane.f32.xlu1 %v3428_v31 }
0x1663   :  { %v3425_v33 = vsel %vm2908_vm5, %v3415_v0, 0.0 }
0x1664   :  { %3426 = vadd.xlane.f32.xlu0 %v3425_v33 }
0x16eb   :  { %v3430_v35 = vpop.xlane.xlu1 %3429 }
0x16ec   :  { %v3433_v36 = vmul.f32 0.0625, %v3430_v35 }
0x16ed   :  { %v3427_v52 = vpop.xlane.xlu0 %3426 }
0x16ee   :  { %v3432_v28 = vmul.f32 0.0625, %v3427_v52  ;;  %v3435_v34 = vsub.f32 %v3420_v29, %v3433_v36 }
0x16f0   :  { %v3434_v30 = vsub.f32 %v3415_v0, %v3432_v28  ;;  %v3437_v39 = vmul.f32 %v3435_v34, %v3435_v34 }
0x16f2   :  { %v3436_v37 = vmul.f32 %v3434_v30, %v3434_v30  ;;  %v3441_v40 = vsel %vm2908_vm5, %v3437_v39, 0.0 }
0x16f4   :  { %v3438_v38 = vsel %vm2908_vm5, %v3436_v37, 0.0 }
0x16f5   :  { %3439 = vadd.xlane.f32.xlu0 %v3438_v38 }
0x16f9   :  { %3442 = vadd.xlane.f32.xlu0 %v3441_v40 }
0x177e   :  { %v3440_v43 = vpop.xlane.xlu0 %3439 }
0x177f   :  { %v3444_v44 = vmul.f32 0.0625, %v3440_v43 }
0x1781   :  { %v3446_v45 = vadd.f32 1e-05, %v3444_v44 }
0x1782   :  { %v3443_v46 = vpop.xlane.xlu0 %3442 }
0x1783   :  { %4366 = vrsqrt.f32 %v3446_v45  ;;  %v3445_v49 = vmul.f32 0.0625, %v3443_v46 }
0x1785   :  { %v3447_v54 = vadd.f32 1e-05, %v3445_v49 }
0x1787   :  { %4368 = vrsqrt.f32 %v3447_v54 }
0x1790   :  { %v4367_v58 = vpop.eup %4366 }
0x1791   :  { %v3450_v62 = vmul.f32 %v4367_v58, %v3434_v30 }
0x1793   :  { %v3458_v21 = vmul.f32 %v3852_v60, %v3450_v62 }
0x1794   :  { %v4369_v23 = vpop.eup %4368 }
0x1795   :  { %v3466_v1 = vadd.f32 %v3853_v63, %v3458_v21  ;;  %v3451_v2 = vmul.f32 %v4369_v23, %v3435_v34 }
0x1797   :  { %3489 = vrot.lane.b32.xlu1 %v3466_v1, %s4435_s25  ;;  %v3459_v3 = vmul.f32 %v3852_v60, %v3451_v2  ;;  %v3483_v4 = vrot.slane %v3466_v1, 1  ;;  %v3477_v50 = vrot.slane %v3466_v1, 7 }
0x1799   :  { %v3467_v59 = vadd.f32 %v3853_v63, %v3459_v3 }
0x179b   :  { %3497 = vrot.lane.b32.xlu1 %v3483_v4, %s4424_s20  ;;  %3491 = vrot.lane.b32.xlu0 %v3467_v59, %s4435_s25  ;;  %v3484_v61 = vrot.slane %v3467_v59, 1  ;;  %v3478_v12 = vrot.slane %v3467_v59, 7 }
0x179f   :  { %3499 = vrot.lane.b32.xlu1 %v3484_v61, %s4424_s20 }
0x1809   :  { %v3490_v5 = vpop.permute.xlu1 %3489 }
0x180a   :  { %v3503_v6 = vsel %vm2908_vm5, %v3477_v50, %v3490_v5  ;;  %v3860_v50 = vld [vmem:[%s5216_s15] ss:$0 sm:$0xff]  ;;  %s4396_s15 = scalar_lea.vmem %s3783_s22, 256 }
0x180b   :  { %p4397_p5 = scmp.ne.s32.totalorder %s3783_s22, %s4396_s15  ;;  %p4402_p7 = scmp.lt.s32.totalorder %s4396_s15, %s4396_s15 }
0x180d   :  { %v3498_v7 = vpop.permute.xlu1 %3497  ;;  %v3492_v10 = vpop.permute.xlu0 %3491  ;;  %p4403_p8 = por %p4402_p7, %p4401_p6 }
0x180e   :  { %v3505_v8 = vsel %vm128_vm0, %v3503_v6, %v3498_v7  ;;  %v3504_v13 = vsel %vm2908_vm5, %v3478_v12, %v3492_v10  ;;  %v3861_v7 = vld [vmem:[%s5217_s16] ss:$0 sm:$0xff] }
0x180f   :  { %4246 = vmatprep.mubr.msk.f32.mxu1 %vm3013_vm9, %v3505_v8  ;;  %p4404_p9 = pnand %p4403_p8, %p4397_p5 }
0x1811   :  { %v3500_v14 = vpop.permute.xlu1 %3499 }
0x1812   :  { %v3506_v15 = vsel %vm128_vm0, %v3504_v13, %v3500_v14 }
0x1813   :  { %4247 = vmatmul.mubr.msk.f32.vlgmr.msra.gmra.mxu1 %vm3013_vm9, %v3506_v15  ;;  %v4374_v15 = vld [vmem:[#allocation2] sm:$0xff] }
0x18d3   :  { %v4248_v32 = vpop.f32.mrf.mxu1 }
0x18d4   :  { %v3591_v47 = vadd.f32 %v4248_v32, %v3854_v9 }
0x18d5   :  { %v3585_v29 = vpop.f32.mrf.mxu1 }
0x18d6   :  { %v3595_v51 = vmax.f32 %v3591_v47, 0.0  ;;  %v3586_v0 = vadd.f32 %v3854_v9, %v3585_v29 }
0x18d8   :  { %v3594_v31 = vmax.f32 %v3586_v0, 0.0  ;;  %3625 = vrot.lane.b32.xlu1 %v3595_v51, %s4424_s20  ;;  %v3618_v33 = vrot.slane %v3595_v51, 1  ;;  %v3612_v34 = vrot.slane %v3595_v51, 7 }
0x18da   :  { %3623 = vrot.lane.b32.xlu0 %v3594_v31, %s4424_s20  ;;  %v3617_v35 = vrot.slane %v3594_v31, 1  ;;  %v3611_v28 = vrot.slane %v3594_v31, 7 }
0x18dc   :  { %3633 = vrot.lane.b32.xlu1 %v3618_v33, %s4425_s30 }
0x18de   :  { %3631 = vrot.lane.b32.xlu0 %v3617_v35, %s4425_s30 }
0x194a   :  { %v3626_v36 = vpop.permute.xlu1 %3625 }
0x194b   :  { %v3638_v39 = vsel %vm128_vm0, %v3612_v34, %v3626_v36 }
0x194c   :  { %v3624_v52 = vpop.permute.xlu0 %3623 }
0x194d   :  { %v3637_v37 = vsel %vm128_vm0, %v3611_v28, %v3624_v52 }
0x194e   :  { %v3634_v30 = vpop.permute.xlu1 %3633 }
0x194f   :  { %v3640_v41 = vsel %vm131_vm1, %v3638_v39, %v3634_v30 }
0x1950   :  { %v3632_v38 = vpop.permute.xlu0 %3631 }
0x1951   :  { %v3639_v40 = vsel %vm131_vm1, %v3637_v37, %v3632_v38 }
0x1952   :  { %4273 = vmatprep.mubr.msk.f32.mxu0 %vm145_vm2, %v3639_v40 }
0x1953   :  { %4274 = vmatmul.mubr.msk.f32.vlgmr.msra.gmra.mxu0 %vm145_vm2, %v3640_v41 }
0x1a13   :  { %v4275_v43 = vpop.f32.mrf.mxu0 }
0x1a14   :  { %v3725_v44 = vadd.f32 %v4275_v43, %v3857_v42 }
0x1a15   :  { %v3719_v45 = vpop.f32.mrf.mxu0 }
0x1a16   :  { %v3720_v46 = vadd.f32 %v3857_v42, %v3719_v45  ;;  %v3733_v49 = vsel %vm128_vm0, %v3725_v44, 0.0 }
0x1a17   :  { %3734 = vadd.xlane.f32.xlu1 %v3733_v49 }
0x1a18   :  { %v3730_v54 = vsel %vm128_vm0, %v3720_v46, 0.0 }
0x1a19   :  { %3731 = vadd.xlane.f32.xlu0 %v3730_v54 }
0x1aa0   :  { %v3735_v55 = vpop.xlane.xlu1 %3734 }
0x1aa1   :  { %v3738_v56 = vmul.f32 0.03125, %v3735_v55 }
0x1aa2   :  { %v3732_v57 = vpop.xlane.xlu0 %3731 }
0x1aa3   :  { %v3737_v53 = vmul.f32 0.03125, %v3732_v57  ;;  %v3740_v58 = vsub.f32 %v3725_v44, %v3738_v56 }
0x1aa5   :  { %v3739_v60 = vsub.f32 %v3720_v46, %v3737_v53  ;;  %v3742_v21 = vmul.f32 %v3740_v58, %v3740_v58 }
0x1aa7   :  { %v3741_v62 = vmul.f32 %v3739_v60, %v3739_v60  ;;  %v3746_v23 = vsel %vm128_vm0, %v3742_v21, 0.0 }
0x1aa9   :  { %v3743_v63 = vsel %vm128_vm0, %v3741_v62, 0.0 }
0x1aaa   :  { %3744 = vadd.xlane.f32.xlu0 %v3743_v63 }
0x1aae   :  { %3747 = vadd.xlane.f32.xlu0 %v3746_v23 }
0x1b33   :  { %v3745_v1 = vpop.xlane.xlu0 %3744 }
0x1b34   :  { %v3749_v2 = vmul.f32 0.03125, %v3745_v1 }
0x1b36   :  { %v3751_v3 = vadd.f32 1e-05, %v3749_v2 }
0x1b37   :  { %v3748_v4 = vpop.xlane.xlu0 %3747 }
0x1b38   :  { %4370 = vrsqrt.f32 %v3751_v3  ;;  %v3750_v59 = vmul.f32 0.03125, %v3748_v4 }
0x1b3a   :  { %v3752_v61 = vadd.f32 1e-05, %v3750_v59 }
0x1b3c   :  { %4372 = vrsqrt.f32 %v3752_v61 }
0x1b45   :  { %v4371_v5 = vpop.eup %4370 }
0x1b46   :  { %v3755_v6 = vmul.f32 %v4371_v5, %v3739_v60 }
0x1b48   :  { %v3763_v8 = vmul.f32 %v3860_v50, %v3755_v6 }
0x1b49   :  { %v4373_v10 = vpop.eup %4372 }
0x1b4a   :  { %v3756_v12 = vmul.f32 %v4373_v10, %v3740_v58  ;;  %v3771_v13 = vadd.f32 %v3861_v7, %v3763_v8 }
0x1b4c   :  { %v3764_v14 = vmul.f32 %v3860_v50, %v3756_v12  ;;  %v3773_v16 = vadd.f32 %v4374_v15, %v3771_v13 }
0x1b4e   :  { %v3772_v17 = vadd.f32 %v3861_v7, %v3764_v14  ;;  %3775 = vst.msk [vmem:[#allocation5] sm:$0xff] %vm128_vm0, %v3773_v16 }
0x1b50   :  { %v3774_v19 = vadd.f32 %v4375_v18, %v3772_v17 }
0x1b52   :  { %3776 = vst.msk [vmem:[#allocation5 + $0x8] sm:$0xff] %vm128_vm0, %v3774_v19 }
0x1b53   :  { %4407 = shalt.err (!%p4404_p9)
}
0x1b54   :  { %3788 = dma.vmem_to_hbm [thread:$0]  %s3783_s22, 256, %s5218_s17, [#allocation4], %s4421_s27, %s4421_s27, %s4422_s28  }
0x1b55   :  { %4418 = dma.done.wait [#allocation4], 256  }
0x1b56   :  { %4419 = vsyncadd [#allocation4], 4294967040 }
0x1b57   :  { %3792 = vsyncpa [#allocation3], 1 }
0x1b58   :  { %3793 = vsyncpa [#allocation4], 1 }

</bundles_post_ra>
